<compile_context>
chip_gen: v7x
topology: tpu7x:2x2x1
jax: 0.10.0
libtpu: 0.0.40
codegen_flags: <defaults>
</compile_context>

<pallas_src>
import functools

import jax
import jax.numpy as jnp
from jax import lax
from jax.experimental import pallas as pl
from jax.experimental.pallas import tpu as pltpu

DOWNSCALING_FACTOR = 10.0
EPS = 1e-5


def _relu(x):
    return jnp.maximum(x, 0.0)


# ----------------------------------------------------------------------------- kernel
def nbody_kernel(
    x_ref,            # (Bblk, N, D) f32, original scale
    w_enc_ref,        # (D, E)        mxu dtype
    w_layers_ref,     # (2L, E, E)    mxu dtype   [2l]=msg, [2l+1]=upd
    b_node_ref,       # (2L+1, 1, E)  f32         [0]=enc, [1+2l]=msg, [2+2l]=upd
    w_edge_ref,       # (L, 2)        f32, SMEM
    w_h1_ref,         # (E, 2E)       mxu dtype   fused mu/std head, stage 1
    b_h1_ref,         # (1, 2E)       f32
    w_h2_ref,         # (2E, 2D)      mxu dtype   block-diag stage 2 (10x + dt-shift folded)
    b_h2_ref,         # (1, 2D)       f32
    a_mix_ref,        # (D, D)        f32         x_orig residual + dt-shift
    out_ref,          # (3, Bblk, N, D) f32       [mu, sigma, sample]
    *, num_layers, eps,
):
    f32 = jnp.float32
    x3 = x_ref[...]                                   # (Bblk, N, D)
    bblk, n, d = x3.shape
    bn = bblk * n
    mxu_dt = w_enc_ref.dtype

    xo = x3.reshape(bn, d)                            # original scale (free reshape)
    xs = xo * f32(1.0 / DOWNSCALING_FACTOR)           # downscaled input

    # ---- channel masks (no minor-dim gathers / scatters) ---------------------
    ch = lax.broadcasted_iota(jnp.int32, (bn, d), 1)
    static_mask = (ch == 0) | (ch == 4)
    pos_maskf = ((ch >= 1) & (ch <= 3)).astype(f32)
    vel_maskf = ((ch >= 5) & (ch <= 7)).astype(f32)

    # ---- block-diagonal edge structure over the flattened (bn, bn) matrices ---
    ridx = lax.broadcasted_iota(jnp.int32, (bn, 1), 0)        # row flat index
    cidx = lax.broadcasted_iota(jnp.int32, (1, bn), 1)        # col flat index
    diagf = (ridx == cidx).astype(f32)                        # (bn, bn)
    # same-sample mask built without integer division: one-hot sample membership
    # (bn, bblk) -> MXU outer product (exact 0/1 values).
    lo = lax.broadcasted_iota(jnp.int32, (1, bblk), 1) * n
    s_onehot = ((ridx >= lo) & (ridx < lo + n)).astype(f32)   # (bn, bblk)
    samef = lax.dot_general(s_onehot, s_onehot, (((1,), (1,)), ((), ())),
                            preferred_element_type=f32)       # (bn, bn)
    edge_mask = samef * (1.0 - diagf)                         # same sample, off-diagonal

    # ---- construct_edge_features ---------------------------------------------
    # ||f_i - f_j||^2 = |f_i|^2 + |f_j|^2 - 2 f_i.f_j, one Gram matmul per
    # feature (f32, HIGHEST precision: review's cancellation concern).  The
    # channel mask zeros everything outside the pos / vel slots so the full-D
    # contraction equals the 3-channel one.  Row/col norms are read from the
    # Gram diagonal (no vector transposes).
    def pairwise_mag(feat):                                   # (bn, d) f32
        gram = lax.dot_general(feat, feat, (((1,), (1,)), ((), ())),
                               precision=lax.Precision.HIGHEST,
                               preferred_element_type=f32)    # (bn, bn)
        gdiag = gram * diagf
        nrm_i = jnp.sum(gdiag, axis=1, keepdims=True)         # (bn, 1)  |f_i|^2
        nrm_j = jnp.sum(gdiag, axis=0, keepdims=True)         # (1, bn)  |f_j|^2
        d2 = jnp.maximum(nrm_i + nrm_j - 2.0 * gram, 0.0)
        return jnp.sqrt(d2 + diagf * 1e-6) * edge_mask

    dist = pairwise_mag(xs * pos_maskf)                       # edge_feat[..., 0]
    relv = pairwise_mag(xs * vel_maskf)                       # edge_feat[..., 1]

    # ---- synthetic Enc_Proc_Dec ('gnn' processor) -----------------------------
    # TODO(synk): stand-in for the external Enc_Proc_Dec; node embeddings (bn, E).
    h = _relu(jnp.dot(xs.astype(mxu_dt), w_enc_ref[...],
                      preferred_element_type=f32) + b_node_ref[0])
    # TODO(synk): switch to lax.fori_loop with dynamic layer indexing if
    # num_layers grows beyond a few (unrolled here, L is small).
    for l in range(num_layers):
        a = dist * w_edge_ref[l, 0] + relv * w_edge_ref[l, 1]          # (bn, bn)
        m = _relu(jnp.dot(h.astype(mxu_dt), w_layers_ref[2 * l],
                          preferred_element_type=f32) + b_node_ref[1 + 2 * l])
        agg = jnp.dot(a.astype(mxu_dt), m.astype(mxu_dt),
                      preferred_element_type=f32)                      # (bn, E)
        h = _relu(h + jnp.dot(agg.astype(mxu_dt), w_layers_ref[2 * l + 1],
                              preferred_element_type=f32) + b_node_ref[2 + 2 * l])

    # ---- fused emb_to_mu / emb_to_std heads -----------------------------------
    hr = _relu(h)
    h1 = _relu(jnp.dot(hr.astype(mxu_dt), w_h1_ref[...],
                       preferred_element_type=f32) + b_h1_ref[...])    # (bn, 2E)
    h2 = (jnp.dot(h1.astype(mxu_dt), w_h2_ref[...],
                  preferred_element_type=f32) + b_h2_ref[...])         # (bn, 2D)

    # mu = 10 * [ out_dyn_mu @ M + x @ (I + k*S) ]  (M, S, 10x folded on host);
    # keep the x-residual path in f32 / HIGHEST for accuracy on large |x|.
    mu = h2[:, :d] + jnp.dot(xo, a_mix_ref[...],
                             precision=lax.Precision.HIGHEST,
                             preferred_element_type=f32)
    out_std = h2[:, d:]

    log_sigma = jnp.where(static_mask, f32(eps), out_std)
    sigma = jax.nn.softplus(log_sigma) + f32(eps)

    # pred_sample = mean of Normal(mu, sigma); static channels reset to x_orig
    sample = jnp.where(static_mask, xo, mu)

    # three direct whole-slab stores (no lane concatenation / relayout)
    out_ref[0] = mu.reshape(bblk, n, d)
    out_ref[1] = sigma.reshape(bblk, n, d)
    out_ref[2] = sample.reshape(bblk, n, d)


# ----------------------------------------------------------------------------- host helpers
def _device_kind():
    try:
        return jax.devices()[0].device_kind.lower()
    except Exception:
        return ""


def _is_v7x():
    kind = _device_kind()
    return ("v7" in kind) or ("7x" in kind)


def _vmem_capacity_bytes():
    try:
        cap = getattr(pltpu.get_tpu_info(), "vmem_capacity_bytes", None)
        if cap:
            return int(cap)
    except Exception:
        pass
    # conservative fallback (v7x physical per-TC VMEM)
    return 64 << 20


def _kernel_vmem_estimate(bblk, n, d, e):
    bn = bblk * n
    # dist / relv / A / masks (~6 bn^2 f32) + node activations + I/O blocks
    return 4 * (6 * bn * bn + 14 * bn * 2 * e + 8 * bblk * n * d) + (1 << 20)


def _pick_bblk(batch, n, d, e):
    """One grid step on single-TC chips (v5e/v6e); two 'parallel' steps on v7x
    so both TensorCores are used; then cap bn so the resident (bn, bn) edge
    matrices stay well inside VMEM."""
    bblk = batch
    if _is_v7x() and batch >= 2 and batch % 2 == 0:
        bblk = batch // 2
    budget = max(_vmem_capacity_bytes() // 4, 8 << 20)
    while bblk > 1 and bblk % 2 == 0 and _kernel_vmem_estimate(bblk, n, d, e) > budget:
        bblk //= 2
    return bblk


# ----------------------------------------------------------------------------- wrapper
def n_body_simulator_forward(x_orig, x_true_orig, params, *, num_layers,
                             pred_stepsize, eps=EPS, bblk=None,
                             mxu_dtype=jnp.bfloat16):
    """Returns ((mu, sigma), additional_loss, pred_sample); (mu, sigma) are the
    parameters of the predictive Normal distribution."""
    del x_true_orig  # TODO(synk): only feeds the (unavailable) VAE posterior path.
    B, N, D = x_orig.shape
    E = params["w_enc"].shape[1]
    L = num_layers
    f32 = jnp.float32

    # ---- host-side weight preprocessing (tiny, once per call) ----------------
    idx = jnp.arange(D)
    dyn_diag = jnp.diag(((idx != 0) & (idx != 4)).astype(f32))        # dynamic chans
    rd, cd = idx[:, None], idx[None, :]
    shift = ((rd == cd + 4) & (cd >= 1) & (cd <= 3)).astype(f32)      # vel -> pos cols
    k = pred_stepsize / 100.0
    m_mix = dyn_diag + k * shift                    # applied to out_dyn_mu
    a_mix = jnp.eye(D, dtype=f32) + k * shift       # applied to x_orig (10x / /10 cancel)

    w_mu2_eff = DOWNSCALING_FACTOR * (params["w_mu2"] @ m_mix)
    b_mu2_eff = DOWNSCALING_FACTOR * (params["b_mu2"] @ m_mix)

    w_h1 = jnp.concatenate([params["w_mu1"], params["w_std1"]], axis=1)   # (E, 2E)
    b_h1 = jnp.concatenate([params["b_mu1"], params["b_std1"]], axis=1)   # (1, 2E)
    zed = jnp.zeros((E, D), f32)
    w_h2 = jnp.concatenate(
        [jnp.concatenate([w_mu2_eff, zed], axis=1),
         jnp.concatenate([zed, params["w_std2"]], axis=1)], axis=0)       # (2E, 2D)
    b_h2 = jnp.concatenate([b_mu2_eff, params["b_std2"]], axis=1)         # (1, 2D)

    # layer weights/biases stacked along the leading axis (fewer operands,
    # clean static leading-index slicing in-kernel, no lane slicing)
    w_layers = jnp.concatenate(
        [params["w_msg"][:, None], params["w_upd"][:, None]], axis=1
    ).reshape(2 * L, E, E)                                                # (2L, E, E)
    b_layers = jnp.concatenate(
        [params["b_msg"][:, None, None, :], params["b_upd"][:, None, None, :]],
        axis=1).reshape(2 * L, 1, E)
    b_node = jnp.concatenate([params["b_enc"][None], b_layers], axis=0)   # (2L+1, 1, E)

    # MXU operand dtype (bf16 per perf review; f32 for exact verification)
    w_enc = params["w_enc"].astype(mxu_dtype)
    w_layers = w_layers.astype(mxu_dtype)
    w_h1 = w_h1.astype(mxu_dtype)
    w_h2 = w_h2.astype(mxu_dtype)

    # ---- generation-aware batch blocking --------------------------------------
    if bblk is None:
        bblk = _pick_bblk(B, N, D, E)
    assert B % bblk == 0, "batch must be divisible by the batch-block size"
    grid = (B // bblk,)

    est = _kernel_vmem_estimate(bblk, N, D, E)
    vmem_limit = None
    if est > (12 << 20):   # only raise the scoped limit when actually needed
        vmem_limit = int(min(max(2 * est, 32 << 20),
                             max(_vmem_capacity_bytes() - (8 << 20), 32 << 20)))

    kernel = functools.partial(nbody_kernel, num_layers=L, eps=eps)

    def full_spec(a):
        nd = a.ndim
        return pl.BlockSpec(a.shape, lambda b, _z=(0,) * nd: _z)

    in_specs = [
        pl.BlockSpec((bblk, N, D), lambda b: (b, 0, 0)),            # x
        full_spec(w_enc), full_spec(w_layers), full_spec(b_node),
        pl.BlockSpec(memory_space=pltpu.MemorySpace.SMEM),          # w_edge scalars
        full_spec(w_h1), full_spec(b_h1), full_spec(w_h2), full_spec(b_h2),
        full_spec(a_mix),
    ]
    out_spec = pl.BlockSpec((3, bblk, N, D), lambda b: (0, b, 0, 0))
    out_shape = jax.ShapeDtypeStruct((3, B, N, D), jnp.float32)

    packed = pl.pallas_call(
        kernel,
        grid=grid,
        in_specs=in_specs,
        out_specs=out_spec,
        out_shape=out_shape,
        compiler_params=pltpu.CompilerParams(
            dimension_semantics=("parallel",),
            vmem_limit_bytes=vmem_limit),
    )(
        x_orig.astype(jnp.float32),
        w_enc, w_layers, b_node,
        params["w_edge"].astype(jnp.float32),
        w_h1, b_h1, w_h2, b_h2,
        a_mix,
    )

    mu, sigma, sample = packed[0], packed[1], packed[2]
    additional_loss = jnp.float32(0.0)  # TODO(synk): Enc_Proc_Dec VAE loss path unavailable.
    return (mu, sigma), additional_loss, sample


# ----------------------------------------------------------------------------- reference
def _reference_forward(x_orig, params, *, num_layers, pred_stepsize, eps=EPS):
    """Pure-JAX mirror of the forward pass (PyTorch-style channel indexing)."""
    B, N, D = x_orig.shape
    x = x_orig / DOWNSCALING_FACTOR
    eye = jnp.eye(N, dtype=jnp.float32)[None]

    def edge_mag(feat):
        diff = feat[:, :, None, :] - feat[:, None, :, :]
        d2 = jnp.sum(diff * diff, axis=-1)
        return jnp.sqrt(d2 + eye * 1e-6) * (1.0 - eye)

    dist = edge_mag(x[..., 1:4])
    relv = edge_mag(x[..., 5:8])

    h = jax.nn.relu(x @ params["w_enc"] + params["b_enc"])
    for l in range(num_layers):
        a = dist * params["w_edge"][l, 0] + relv * params["w_edge"][l, 1]
        m = jax.nn.relu(h @ params["w_msg"][l] + params["b_msg"][l])
        agg = jnp.einsum("bnm,bme->bne", a, m)
        h = jax.nn.relu(h + agg @ params["w_upd"][l] + params["b_upd"][l])

    out_mu = (jax.nn.relu(jax.nn.relu(h) @ params["w_mu1"] + params["b_mu1"])
              @ params["w_mu2"] + params["b_mu2"])
    out_std = (jax.nn.relu(jax.nn.relu(h) @ params["w_std1"] + params["b_std1"])
               @ params["w_std2"] + params["b_std2"])

    static, pos_i, vel_i = [0, 4], [1, 2, 3], [5, 6, 7]
    dyn = [1, 2, 3, 5, 6, 7]
    mu = jnp.zeros_like(x)
    log_sigma = jnp.zeros_like(x)
    mu = mu.at[..., static].add(x[..., static])
    mu = mu.at[..., vel_i].add(out_mu[..., vel_i] + x[..., vel_i])
    mu = mu.at[..., pos_i].add(out_mu[..., pos_i] + x[..., pos_i]
                               + mu[..., vel_i] * pred_stepsize / 100.0)
    log_sigma = log_sigma.at[..., static].add(eps)
    log_sigma = log_sigma.at[..., dyn].add(out_std[..., dyn])
    sigma = jax.nn.softplus(log_sigma) + eps
    mu = DOWNSCALING_FACTOR * mu
    sample = mu.at[..., static].set(x_orig[..., static])
    return mu, sigma, sample


# ----------------------------------------------------------------------------- test
if __name__ == "__main__":
    import numpy as np

    B, N, D, E, L = 4, 8, 8, 32, 2   # batch, bodies, im_dim, emb_dim, num_layers
    key = jax.random.PRNGKey(0)
    keys = jax.random.split(key, 20)

    x_orig = jax.random.normal(keys[0], (B, N, D), jnp.float32) * 5.0
    x_true = jax.random.normal(keys[1], (B, N, D), jnp.float32) * 5.0

    def init(k, shape, scale=0.1):
        return jax.random.normal(k, shape, jnp.float32) * scale

    params = dict(
        w_enc=init(keys[2], (D, E)),   b_enc=init(keys[3], (1, E)),
        w_msg=init(keys[4], (L, E, E)), b_msg=init(keys[5], (L, E)),
        w_upd=init(keys[6], (L, E, E)), b_upd=init(keys[7], (L, E)),
        w_edge=init(keys[8], (L, 2)),
        w_mu1=init(keys[9], (E, E)),   b_mu1=init(keys[10], (1, E)),
        w_mu2=init(keys[11], (E, D)),  b_mu2=init(keys[12], (1, D)),
        w_std1=init(keys[13], (E, E)), b_std1=init(keys[14], (1, E)),
        w_std2=init(keys[15], (E, D)), b_std2=init(keys[16], (1, D)),
    )

    # exact-precision config (f32 MXU operands): verified at tight tolerance.
    (mu, sigma), add_loss, pred_sample = n_body_simulator_forward(
        x_orig, x_true, params, num_layers=L, pred_stepsize=5.0,
        mxu_dtype=jnp.float32)
    jax.block_until_ready((mu, sigma, pred_sample, add_loss))

    assert mu.shape == (B, N, D) and sigma.shape == (B, N, D)
    assert pred_sample.shape == (B, N, D)

    # performance config (bf16 MXU operands, per the perf review):
    # exercised and checked at a bf16-appropriate tolerance.
    (mu_bf, sigma_bf), _, sample_bf = n_body_simulator_forward(
        x_orig, x_true, params, num_layers=L, pred_stepsize=5.0,
        mxu_dtype=jnp.bfloat16)
    jax.block_until_ready((mu_bf, sigma_bf, sample_bf))

    # High-precision pure-JAX reference (run after the kernels so the precision
    # override does not affect kernel tracing).
    with jax.default_matmul_precision("highest"):
        mu_ref, sigma_ref, sample_ref = _reference_forward(
            x_orig, params, num_layers=L, pred_stepsize=5.0)
        jax.block_until_ready((mu_ref, sigma_ref, sample_ref))

    np.testing.assert_allclose(np.asarray(mu), np.asarray(mu_ref),
                               atol=2e-3, rtol=2e-3)
    np.testing.assert_allclose(np.asarray(sigma), np.asarray(sigma_ref),
                               atol=2e-3, rtol=2e-3)
    np.testing.assert_allclose(np.asarray(pred_sample), np.asarray(sample_ref),
                               atol=2e-3, rtol=2e-3)

    np.testing.assert_allclose(np.asarray(mu_bf), np.asarray(mu_ref),
                               atol=5e-2, rtol=5e-2)
    np.testing.assert_allclose(np.asarray(sigma_bf), np.asarray(sigma_ref),
                               atol=5e-2, rtol=5e-2)
    np.testing.assert_allclose(np.asarray(sample_bf), np.asarray(sample_ref),
                               atol=5e-2, rtol=5e-2)

    print("KERNEL_OK")
</pallas_src>

<mosaic_0001>
module attributes {stable_mosaic.version = 11 : i64} {
  func.func @nbody_kernel(%arg0: i32, %arg1: memref<4x8x8xf32, #tpu.memory_space<vmem>>, %arg2: memref<8x32xf32, #tpu.memory_space<vmem>>, %arg3: memref<4x32x32xf32, #tpu.memory_space<vmem>>, %arg4: memref<5x1x32xf32, #tpu.memory_space<vmem>>, %arg5: memref<2x2xf32, #tpu.memory_space<smem>>, %arg6: memref<32x64xf32, #tpu.memory_space<vmem>>, %arg7: memref<1x64xf32, #tpu.memory_space<vmem>>, %arg8: memref<64x16xf32, #tpu.memory_space<vmem>>, %arg9: memref<1x16xf32, #tpu.memory_space<vmem>>, %arg10: memref<8x8xf32, #tpu.memory_space<vmem>>, %arg11: memref<3x4x8x8xf32, #tpu.memory_space<vmem>>) attributes {dimension_semantics = [#tpu.dimension_semantics<parallel>], iteration_bounds = array<i64: 1>, scalar_prefetch = 0 : i64, scratch_operands = 0 : i64, tpu.core_type = #tpu.core_type<tc>, window_params = [{transform_indices = @transform_0, window_bounds = array<i64: 4, 8, 8>}, {pipeline_mode = #tpu.pipeline_mode<synchronous>, transform_indices = @transform_1, window_bounds = array<i64: 8, 32>}, {pipeline_mode = #tpu.pipeline_mode<synchronous>, transform_indices = @transform_2, window_bounds = array<i64: 4, 32, 32>}, {pipeline_mode = #tpu.pipeline_mode<synchronous>, transform_indices = @transform_3, window_bounds = array<i64: 5, 1, 32>}, {transform_indices = @transform_4, window_bounds = array<i64: 2, 2>}, {pipeline_mode = #tpu.pipeline_mode<synchronous>, transform_indices = @transform_5, window_bounds = array<i64: 32, 64>}, {pipeline_mode = #tpu.pipeline_mode<synchronous>, transform_indices = @transform_6, window_bounds = array<i64: 1, 64>}, {pipeline_mode = #tpu.pipeline_mode<synchronous>, transform_indices = @transform_7, window_bounds = array<i64: 64, 16>}, {pipeline_mode = #tpu.pipeline_mode<synchronous>, transform_indices = @transform_8, window_bounds = array<i64: 1, 16>}, {pipeline_mode = #tpu.pipeline_mode<synchronous>, transform_indices = @transform_9, window_bounds = array<i64: 8, 8>}, {transform_indices = @transform_10, window_bounds = array<i64: 3, 4, 8, 8>}]} {
    %c0 = arith.constant 0 : index
    %c0_0 = arith.constant 0 : index
    %c0_1 = arith.constant 0 : index
    %0 = vector.load %arg1[%c0, %c0_0, %c0_1] : memref<4x8x8xf32, #tpu.memory_space<vmem>>, vector<4x8x8xf32>
    %1 = vector.shape_cast %0 : vector<4x8x8xf32> to vector<32x8xf32>
    %cst = arith.constant 1.000000e-01 : f32
    %2 = vector.broadcast %cst : f32 to vector<32x8xf32>
    %3 = arith.mulf %1, %2 : vector<32x8xf32>
    %4 = tpu.iota {dimensions = array<i32: 1>} : vector<32x8xi32>
    %c0_i32 = arith.constant 0 : i32
    %5 = vector.broadcast %c0_i32 : i32 to vector<32x8xi32>
    %6 = arith.cmpi eq, %4, %5 : vector<32x8xi32>
    %c4_i32 = arith.constant 4 : i32
    %7 = vector.broadcast %c4_i32 : i32 to vector<32x8xi32>
    %8 = arith.cmpi eq, %4, %7 : vector<32x8xi32>
    %9 = arith.ori %6, %8 : vector<32x8xi1>
    %c1_i32 = arith.constant 1 : i32
    %10 = vector.broadcast %c1_i32 : i32 to vector<32x8xi32>
    %11 = arith.cmpi sge, %4, %10 : vector<32x8xi32>
    %c3_i32 = arith.constant 3 : i32
    %12 = vector.broadcast %c3_i32 : i32 to vector<32x8xi32>
    %13 = arith.cmpi sle, %4, %12 : vector<32x8xi32>
    %14 = arith.andi %11, %13 : vector<32x8xi1>
    %15 = arith.extui %14 : vector<32x8xi1> to vector<32x8xi32>
    %16 = arith.sitofp %15 : vector<32x8xi32> to vector<32x8xf32>
    %c5_i32 = arith.constant 5 : i32
    %17 = vector.broadcast %c5_i32 : i32 to vector<32x8xi32>
    %18 = arith.cmpi sge, %4, %17 : vector<32x8xi32>
    %c7_i32 = arith.constant 7 : i32
    %19 = vector.broadcast %c7_i32 : i32 to vector<32x8xi32>
    %20 = arith.cmpi sle, %4, %19 : vector<32x8xi32>
    %21 = arith.andi %18, %20 : vector<32x8xi1>
    %22 = arith.extui %21 : vector<32x8xi1> to vector<32x8xi32>
    %23 = arith.sitofp %22 : vector<32x8xi32> to vector<32x8xf32>
    %24 = tpu.iota {dimensions = array<i32: 0>} : vector<32x1xi32>
    %25 = tpu.iota {dimensions = array<i32: 1>} : vector<1x32xi32>
    %26 = vector.broadcast %24 : vector<32x1xi32> to vector<32x32xi32>
    %27 = vector.broadcast %25 : vector<1x32xi32> to vector<32x32xi32>
    %28 = arith.cmpi eq, %26, %27 : vector<32x32xi32>
    %29 = arith.extui %28 : vector<32x32xi1> to vector<32x32xi32>
    %30 = arith.sitofp %29 : vector<32x32xi32> to vector<32x32xf32>
    %31 = tpu.iota {dimensions = array<i32: 1>} : vector<1x4xi32>
    %c8_i32 = arith.constant 8 : i32
    %32 = vector.broadcast %c8_i32 : i32 to vector<1x4xi32>
    %33 = arith.muli %31, %32 : vector<1x4xi32>
    %34 = vector.broadcast %24 : vector<32x1xi32> to vector<32x4xi32>
    %35 = vector.broadcast %33 : vector<1x4xi32> to vector<32x4xi32>
    %36 = arith.cmpi sge, %34, %35 : vector<32x4xi32>
    %c8_i32_2 = arith.constant 8 : i32
    %37 = vector.broadcast %c8_i32_2 : i32 to vector<1x4xi32>
    %38 = arith.addi %33, %37 : vector<1x4xi32>
    %39 = vector.broadcast %24 : vector<32x1xi32> to vector<32x4xi32>
    %40 = vector.broadcast %38 : vector<1x4xi32> to vector<32x4xi32>
    %41 = arith.cmpi slt, %39, %40 : vector<32x4xi32>
    %42 = arith.andi %36, %41 : vector<32x4xi1>
    %43 = arith.extui %42 : vector<32x4xi1> to vector<32x4xi32>
    %44 = arith.sitofp %43 : vector<32x4xi32> to vector<32x4xf32>
    %cst_3 = arith.constant dense<0.000000e+00> : vector<32x32xf32>
    %45 = tpu.matmul %44, %44, %cst_3 {dimension_numbers = #tpu.dot_dimension_numbers<[1], [1], [0], [0], [0, 0, 1, 0], [], []>} : vector<32x4xf32>, vector<32x4xf32>, vector<32x32xf32> -> vector<32x32xf32>
    %cst_4 = arith.constant 1.000000e+00 : f32
    %46 = vector.broadcast %cst_4 : f32 to vector<32x32xf32>
    %47 = arith.subf %46, %30 : vector<32x32xf32>
    %48 = arith.mulf %45, %47 : vector<32x32xf32>
    %49 = arith.mulf %3, %16 : vector<32x8xf32>
    %cst_5 = arith.constant dense<0.000000e+00> : vector<32x32xf32>
    %50 = tpu.matmul %49, %49, %cst_5 {dimension_numbers = #tpu.dot_dimension_numbers<[1], [1], [0], [0], [0, 0, 1, 0], [], []>, precision = #tpu.contract_precision<fp32>} : vector<32x8xf32>, vector<32x8xf32>, vector<32x32xf32> -> vector<32x32xf32>
    %51 = arith.mulf %50, %30 : vector<32x32xf32>
    %cst_6 = arith.constant dense<0.000000e+00> : vector<32xf32>
    %52 = vector.multi_reduction <add>, %51, %cst_6 [1] : vector<32x32xf32> to vector<32xf32>
    %53 = vector.shape_cast %52 : vector<32xf32> to vector<32x1xf32>
    %cst_7 = arith.constant dense<0.000000e+00> : vector<32xf32>
    %54 = vector.multi_reduction <add>, %51, %cst_7 [0] : vector<32x32xf32> to vector<32xf32>
    %55 = vector.shape_cast %54 : vector<32xf32> to vector<1x32xf32>
    %56 = vector.broadcast %53 : vector<32x1xf32> to vector<32x32xf32>
    %57 = vector.broadcast %55 : vector<1x32xf32> to vector<32x32xf32>
    %58 = arith.addf %56, %57 : vector<32x32xf32>
    %cst_8 = arith.constant 2.000000e+00 : f32
    %59 = vector.broadcast %cst_8 : f32 to vector<32x32xf32>
    %60 = arith.mulf %59, %50 : vector<32x32xf32>
    %61 = arith.subf %58, %60 : vector<32x32xf32>
    %cst_9 = arith.constant 0.000000e+00 : f32
    %62 = vector.broadcast %cst_9 : f32 to vector<32x32xf32>
    %63 = arith.maximumf %61, %62 : vector<32x32xf32>
    %cst_10 = arith.constant 9.99999997E-7 : f32
    %64 = vector.broadcast %cst_10 : f32 to vector<32x32xf32>
    %65 = arith.mulf %30, %64 : vector<32x32xf32>
    %66 = arith.addf %63, %65 : vector<32x32xf32>
    %67 = math.sqrt %66 : vector<32x32xf32>
    %68 = arith.mulf %67, %48 : vector<32x32xf32>
    %69 = arith.mulf %3, %23 : vector<32x8xf32>
    %cst_11 = arith.constant dense<0.000000e+00> : vector<32x32xf32>
    %70 = tpu.matmul %69, %69, %cst_11 {dimension_numbers = #tpu.dot_dimension_numbers<[1], [1], [0], [0], [0, 0, 1, 0], [], []>, precision = #tpu.contract_precision<fp32>} : vector<32x8xf32>, vector<32x8xf32>, vector<32x32xf32> -> vector<32x32xf32>
    %71 = arith.mulf %70, %30 : vector<32x32xf32>
    %cst_12 = arith.constant dense<0.000000e+00> : vector<32xf32>
    %72 = vector.multi_reduction <add>, %71, %cst_12 [1] : vector<32x32xf32> to vector<32xf32>
    %73 = vector.shape_cast %72 : vector<32xf32> to vector<32x1xf32>
    %cst_13 = arith.constant dense<0.000000e+00> : vector<32xf32>
    %74 = vector.multi_reduction <add>, %71, %cst_13 [0] : vector<32x32xf32> to vector<32xf32>
    %75 = vector.shape_cast %74 : vector<32xf32> to vector<1x32xf32>
    %76 = vector.broadcast %73 : vector<32x1xf32> to vector<32x32xf32>
    %77 = vector.broadcast %75 : vector<1x32xf32> to vector<32x32xf32>
    %78 = arith.addf %76, %77 : vector<32x32xf32>
    %cst_14 = arith.constant 2.000000e+00 : f32
    %79 = vector.broadcast %cst_14 : f32 to vector<32x32xf32>
    %80 = arith.mulf %79, %70 : vector<32x32xf32>
    %81 = arith.subf %78, %80 : vector<32x32xf32>
    %cst_15 = arith.constant 0.000000e+00 : f32
    %82 = vector.broadcast %cst_15 : f32 to vector<32x32xf32>
    %83 = arith.maximumf %81, %82 : vector<32x32xf32>
    %cst_16 = arith.constant 9.99999997E-7 : f32
    %84 = vector.broadcast %cst_16 : f32 to vector<32x32xf32>
    %85 = arith.mulf %30, %84 : vector<32x32xf32>
    %86 = arith.addf %83, %85 : vector<32x32xf32>
    %87 = math.sqrt %86 : vector<32x32xf32>
    %88 = arith.mulf %87, %48 : vector<32x32xf32>
    %c0_17 = arith.constant 0 : index
    %c0_18 = arith.constant 0 : index
    %89 = vector.load %arg2[%c0_17, %c0_18] : memref<8x32xf32, #tpu.memory_space<vmem>>, vector<8x32xf32>
    %cst_19 = arith.constant dense<0.000000e+00> : vector<32x32xf32>
    %90 = tpu.matmul %3, %89, %cst_19 {dimension_numbers = #tpu.dot_dimension_numbers<[1], [0], [0], [1], [0, 0, 1, 1], [], []>} : vector<32x8xf32>, vector<8x32xf32>, vector<32x32xf32> -> vector<32x32xf32>
    %c0_20 = arith.constant 0 : index
    %c0_21 = arith.constant 0 : index
    %c0_22 = arith.constant 0 : index
    %91 = vector.load %arg4[%c0_20, %c0_21, %c0_22] : memref<5x1x32xf32, #tpu.memory_space<vmem>>, vector<1x1x32xf32>
    %92 = vector.shape_cast %91 : vector<1x1x32xf32> to vector<1x32xf32>
    %93 = vector.broadcast %92 : vector<1x32xf32> to vector<32x32xf32>
    %94 = arith.addf %90, %93 : vector<32x32xf32>
    %cst_23 = arith.constant 0.000000e+00 : f32
    %95 = vector.broadcast %cst_23 : f32 to vector<32x32xf32>
    %96 = arith.maximumf %94, %95 : vector<32x32xf32>
    %c0_24 = arith.constant 0 : index
    %c0_25 = arith.constant 0 : index
    %97 = memref.load %arg5[%c0_24, %c0_25] : memref<2x2xf32, #tpu.memory_space<smem>>
    %98 = vector.broadcast %97 : f32 to vector<32x32xf32>
    %99 = arith.mulf %68, %98 : vector<32x32xf32>
    %c0_26 = arith.constant 0 : index
    %c1 = arith.constant 1 : index
    %100 = memref.load %arg5[%c0_26, %c1] : memref<2x2xf32, #tpu.memory_space<smem>>
    %101 = vector.broadcast %100 : f32 to vector<32x32xf32>
    %102 = arith.mulf %88, %101 : vector<32x32xf32>
    %103 = arith.addf %99, %102 : vector<32x32xf32>
    %c0_27 = arith.constant 0 : index
    %c0_28 = arith.constant 0 : index
    %c0_29 = arith.constant 0 : index
    %104 = vector.load %arg3[%c0_27, %c0_28, %c0_29] : memref<4x32x32xf32, #tpu.memory_space<vmem>>, vector<1x32x32xf32>
    %105 = vector.shape_cast %104 : vector<1x32x32xf32> to vector<32x32xf32>
    %cst_30 = arith.constant dense<0.000000e+00> : vector<32x32xf32>
    %106 = tpu.matmul %96, %105, %cst_30 {dimension_numbers = #tpu.dot_dimension_numbers<[1], [0], [0], [1], [0, 0, 1, 1], [], []>} : vector<32x32xf32>, vector<32x32xf32>, vector<32x32xf32> -> vector<32x32xf32>
    %c1_31 = arith.constant 1 : index
    %c0_32 = arith.constant 0 : index
    %c0_33 = arith.constant 0 : index
    %107 = vector.load %arg4[%c1_31, %c0_32, %c0_33] : memref<5x1x32xf32, #tpu.memory_space<vmem>>, vector<1x1x32xf32>
    %108 = vector.shape_cast %107 : vector<1x1x32xf32> to vector<1x32xf32>
    %109 = vector.broadcast %108 : vector<1x32xf32> to vector<32x32xf32>
    %110 = arith.addf %106, %109 : vector<32x32xf32>
    %cst_34 = arith.constant 0.000000e+00 : f32
    %111 = vector.broadcast %cst_34 : f32 to vector<32x32xf32>
    %112 = arith.maximumf %110, %111 : vector<32x32xf32>
    %cst_35 = arith.constant dense<0.000000e+00> : vector<32x32xf32>
    %113 = tpu.matmul %103, %112, %cst_35 {dimension_numbers = #tpu.dot_dimension_numbers<[1], [0], [0], [1], [0, 0, 1, 1], [], []>} : vector<32x32xf32>, vector<32x32xf32>, vector<32x32xf32> -> vector<32x32xf32>
    %c1_36 = arith.constant 1 : index
    %c0_37 = arith.constant 0 : index
    %c0_38 = arith.constant 0 : index
    %114 = vector.load %arg3[%c1_36, %c0_37, %c0_38] : memref<4x32x32xf32, #tpu.memory_space<vmem>>, vector<1x32x32xf32>
    %115 = vector.shape_cast %114 : vector<1x32x32xf32> to vector<32x32xf32>
    %cst_39 = arith.constant dense<0.000000e+00> : vector<32x32xf32>
    %116 = tpu.matmul %113, %115, %cst_39 {dimension_numbers = #tpu.dot_dimension_numbers<[1], [0], [0], [1], [0, 0, 1, 1], [], []>} : vector<32x32xf32>, vector<32x32xf32>, vector<32x32xf32> -> vector<32x32xf32>
    %117 = arith.addf %96, %116 : vector<32x32xf32>
    %c2 = arith.constant 2 : index
    %c0_40 = arith.constant 0 : index
    %c0_41 = arith.constant 0 : index
    %118 = vector.load %arg4[%c2, %c0_40, %c0_41] : memref<5x1x32xf32, #tpu.memory_space<vmem>>, vector<1x1x32xf32>
    %119 = vector.shape_cast %118 : vector<1x1x32xf32> to vector<1x32xf32>
    %120 = vector.broadcast %119 : vector<1x32xf32> to vector<32x32xf32>
    %121 = arith.addf %117, %120 : vector<32x32xf32>
    %cst_42 = arith.constant 0.000000e+00 : f32
    %122 = vector.broadcast %cst_42 : f32 to vector<32x32xf32>
    %123 = arith.maximumf %121, %122 : vector<32x32xf32>
    %c1_43 = arith.constant 1 : index
    %c0_44 = arith.constant 0 : index
    %124 = memref.load %arg5[%c1_43, %c0_44] : memref<2x2xf32, #tpu.memory_space<smem>>
    %125 = vector.broadcast %124 : f32 to vector<32x32xf32>
    %126 = arith.mulf %68, %125 : vector<32x32xf32>
    %c1_45 = arith.constant 1 : index
    %c1_46 = arith.constant 1 : index
    %127 = memref.load %arg5[%c1_45, %c1_46] : memref<2x2xf32, #tpu.memory_space<smem>>
    %128 = vector.broadcast %127 : f32 to vector<32x32xf32>
    %129 = arith.mulf %88, %128 : vector<32x32xf32>
    %130 = arith.addf %126, %129 : vector<32x32xf32>
    %c2_47 = arith.constant 2 : index
    %c0_48 = arith.constant 0 : index
    %c0_49 = arith.constant 0 : index
    %131 = vector.load %arg3[%c2_47, %c0_48, %c0_49] : memref<4x32x32xf32, #tpu.memory_space<vmem>>, vector<1x32x32xf32>
    %132 = vector.shape_cast %131 : vector<1x32x32xf32> to vector<32x32xf32>
    %cst_50 = arith.constant dense<0.000000e+00> : vector<32x32xf32>
    %133 = tpu.matmul %123, %132, %cst_50 {dimension_numbers = #tpu.dot_dimension_numbers<[1], [0], [0], [1], [0, 0, 1, 1], [], []>} : vector<32x32xf32>, vector<32x32xf32>, vector<32x32xf32> -> vector<32x32xf32>
    %c3 = arith.constant 3 : index
    %c0_51 = arith.constant 0 : index
    %c0_52 = arith.constant 0 : index
    %134 = vector.load %arg4[%c3, %c0_51, %c0_52] : memref<5x1x32xf32, #tpu.memory_space<vmem>>, vector<1x1x32xf32>
    %135 = vector.shape_cast %134 : vector<1x1x32xf32> to vector<1x32xf32>
    %136 = vector.broadcast %135 : vector<1x32xf32> to vector<32x32xf32>
    %137 = arith.addf %133, %136 : vector<32x32xf32>
    %cst_53 = arith.constant 0.000000e+00 : f32
    %138 = vector.broadcast %cst_53 : f32 to vector<32x32xf32>
    %139 = arith.maximumf %137, %138 : vector<32x32xf32>
    %cst_54 = arith.constant dense<0.000000e+00> : vector<32x32xf32>
    %140 = tpu.matmul %130, %139, %cst_54 {dimension_numbers = #tpu.dot_dimension_numbers<[1], [0], [0], [1], [0, 0, 1, 1], [], []>} : vector<32x32xf32>, vector<32x32xf32>, vector<32x32xf32> -> vector<32x32xf32>
    %c3_55 = arith.constant 3 : index
    %c0_56 = arith.constant 0 : index
    %c0_57 = arith.constant 0 : index
    %141 = vector.load %arg3[%c3_55, %c0_56, %c0_57] : memref<4x32x32xf32, #tpu.memory_space<vmem>>, vector<1x32x32xf32>
    %142 = vector.shape_cast %141 : vector<1x32x32xf32> to vector<32x32xf32>
    %cst_58 = arith.constant dense<0.000000e+00> : vector<32x32xf32>
    %143 = tpu.matmul %140, %142, %cst_58 {dimension_numbers = #tpu.dot_dimension_numbers<[1], [0], [0], [1], [0, 0, 1, 1], [], []>} : vector<32x32xf32>, vector<32x32xf32>, vector<32x32xf32> -> vector<32x32xf32>
    %144 = arith.addf %123, %143 : vector<32x32xf32>
    %c4 = arith.constant 4 : index
    %c0_59 = arith.constant 0 : index
    %c0_60 = arith.constant 0 : index
    %145 = vector.load %arg4[%c4, %c0_59, %c0_60] : memref<5x1x32xf32, #tpu.memory_space<vmem>>, vector<1x1x32xf32>
    %146 = vector.shape_cast %145 : vector<1x1x32xf32> to vector<1x32xf32>
    %147 = vector.broadcast %146 : vector<1x32xf32> to vector<32x32xf32>
    %148 = arith.addf %144, %147 : vector<32x32xf32>
    %cst_61 = arith.constant 0.000000e+00 : f32
    %149 = vector.broadcast %cst_61 : f32 to vector<32x32xf32>
    %150 = arith.maximumf %148, %149 : vector<32x32xf32>
    %cst_62 = arith.constant 0.000000e+00 : f32
    %151 = vector.broadcast %cst_62 : f32 to vector<32x32xf32>
    %152 = arith.maximumf %150, %151 : vector<32x32xf32>
    %c0_63 = arith.constant 0 : index
    %c0_64 = arith.constant 0 : index
    %153 = vector.load %arg6[%c0_63, %c0_64] : memref<32x64xf32, #tpu.memory_space<vmem>>, vector<32x64xf32>
    %cst_65 = arith.constant dense<0.000000e+00> : vector<32x64xf32>
    %154 = tpu.matmul %152, %153, %cst_65 {dimension_numbers = #tpu.dot_dimension_numbers<[1], [0], [0], [1], [0, 0, 1, 1], [], []>} : vector<32x32xf32>, vector<32x64xf32>, vector<32x64xf32> -> vector<32x64xf32>
    %c0_66 = arith.constant 0 : index
    %c0_67 = arith.constant 0 : index
    %155 = vector.load %arg7[%c0_66, %c0_67] : memref<1x64xf32, #tpu.memory_space<vmem>>, vector<1x64xf32>
    %156 = vector.broadcast %155 : vector<1x64xf32> to vector<32x64xf32>
    %157 = arith.addf %154, %156 : vector<32x64xf32>
    %cst_68 = arith.constant 0.000000e+00 : f32
    %158 = vector.broadcast %cst_68 : f32 to vector<32x64xf32>
    %159 = arith.maximumf %157, %158 : vector<32x64xf32>
    %c0_69 = arith.constant 0 : index
    %c0_70 = arith.constant 0 : index
    %160 = vector.load %arg8[%c0_69, %c0_70] : memref<64x16xf32, #tpu.memory_space<vmem>>, vector<64x16xf32>
    %cst_71 = arith.constant dense<0.000000e+00> : vector<32x16xf32>
    %161 = tpu.matmul %159, %160, %cst_71 {dimension_numbers = #tpu.dot_dimension_numbers<[1], [0], [0], [1], [0, 0, 1, 1], [], []>} : vector<32x64xf32>, vector<64x16xf32>, vector<32x16xf32> -> vector<32x16xf32>
    %c0_72 = arith.constant 0 : index
    %c0_73 = arith.constant 0 : index
    %162 = vector.load %arg9[%c0_72, %c0_73] : memref<1x16xf32, #tpu.memory_space<vmem>>, vector<1x16xf32>
    %163 = vector.broadcast %162 : vector<1x16xf32> to vector<32x16xf32>
    %164 = arith.addf %161, %163 : vector<32x16xf32>
    %165 = vector.extract_strided_slice %164 {offsets = [0, 0], sizes = [32, 8], strides = [1, 1]} : vector<32x16xf32> to vector<32x8xf32>
    %c0_74 = arith.constant 0 : index
    %c0_75 = arith.constant 0 : index
    %166 = vector.load %arg10[%c0_74, %c0_75] : memref<8x8xf32, #tpu.memory_space<vmem>>, vector<8x8xf32>
    %cst_76 = arith.constant dense<0.000000e+00> : vector<32x8xf32>
    %167 = tpu.matmul %1, %166, %cst_76 {dimension_numbers = #tpu.dot_dimension_numbers<[1], [0], [0], [1], [0, 0, 1, 1], [], []>, precision = #tpu.contract_precision<fp32>} : vector<32x8xf32>, vector<8x8xf32>, vector<32x8xf32> -> vector<32x8xf32>
    %168 = arith.addf %165, %167 : vector<32x8xf32>
    %169 = vector.extract_strided_slice %164 {offsets = [0, 8], sizes = [32, 8], strides = [1, 1]} : vector<32x16xf32> to vector<32x8xf32>
    %cst_77 = arith.constant 9.99999974E-6 : f32
    %170 = vector.broadcast %cst_77 : f32 to vector<32x8xf32>
    %171 = arith.select %9, %170, %169 : vector<32x8xi1>, vector<32x8xf32>
    %cst_78 = arith.constant 0.000000e+00 : f32
    %172 = vector.broadcast %cst_78 : f32 to vector<32x8xf32>
    %173 = arith.maximumf %171, %172 : vector<32x8xf32>
    %174 = vector.broadcast %cst_78 : f32 to vector<32x8xf32>
    %175 = arith.subf %171, %174 : vector<32x8xf32>
    %176 = arith.cmpf one, %175, %175 : vector<32x8xf32>
    %177 = vector.broadcast %cst_78 : f32 to vector<32x8xf32>
    %178 = arith.addf %171, %177 : vector<32x8xf32>
    %179 = math.absf %175 : vector<32x8xf32>
    %cst_79 = arith.constant 0.000000e+00 : f32
    %180 = vector.broadcast %cst_79 : f32 to vector<32x8xf32>
    %181 = arith.subf %180, %179 : vector<32x8xf32>
    %182 = math.exp %181 : vector<32x8xf32>
    %183 = math.log1p %182 : vector<32x8xf32>
    %184 = arith.addf %173, %183 : vector<32x8xf32>
    %185 = arith.select %176, %178, %184 : vector<32x8xi1>, vector<32x8xf32>
    %cst_80 = arith.constant 9.99999974E-6 : f32
    %186 = vector.broadcast %cst_80 : f32 to vector<32x8xf32>
    %187 = arith.addf %185, %186 : vector<32x8xf32>
    %188 = arith.select %9, %1, %168 : vector<32x8xi1>, vector<32x8xf32>
    %189 = vector.shape_cast %168 : vector<32x8xf32> to vector<4x8x8xf32>
    %c0_81 = arith.constant 0 : index
    %c0_82 = arith.constant 0 : index
    %c0_83 = arith.constant 0 : index
    %c0_84 = arith.constant 0 : index
    %190 = vector.load %arg11[%c0_81, %c0_82, %c0_83, %c0_84] : memref<3x4x8x8xf32, #tpu.memory_space<vmem>>, vector<1x4x8x8xf32>
    %191 = vector.shape_cast %190 : vector<1x4x8x8xf32> to vector<4x8x8xf32>
    %192 = vector.shape_cast %189 : vector<4x8x8xf32> to vector<1x4x8x8xf32>
    tpu.vector_store %arg11[%c0_81, %c0_82, %c0_83, %c0_84], %192 {strides = array<i32>} : memref<3x4x8x8xf32, #tpu.memory_space<vmem>>, vector<1x4x8x8xf32>,
    %193 = vector.shape_cast %187 : vector<32x8xf32> to vector<4x8x8xf32>
    %c1_85 = arith.constant 1 : index
    %c0_86 = arith.constant 0 : index
    %c0_87 = arith.constant 0 : index
    %c0_88 = arith.constant 0 : index
    %194 = vector.load %arg11[%c1_85, %c0_86, %c0_87, %c0_88] : memref<3x4x8x8xf32, #tpu.memory_space<vmem>>, vector<1x4x8x8xf32>
    %195 = vector.shape_cast %194 : vector<1x4x8x8xf32> to vector<4x8x8xf32>
    %196 = vector.shape_cast %193 : vector<4x8x8xf32> to vector<1x4x8x8xf32>
    tpu.vector_store %arg11[%c1_85, %c0_86, %c0_87, %c0_88], %196 {strides = array<i32>} : memref<3x4x8x8xf32, #tpu.memory_space<vmem>>, vector<1x4x8x8xf32>,
    %197 = vector.shape_cast %188 : vector<32x8xf32> to vector<4x8x8xf32>
    %c2_89 = arith.constant 2 : index
    %c0_90 = arith.constant 0 : index
    %c0_91 = arith.constant 0 : index
    %c0_92 = arith.constant 0 : index
    %198 = vector.load %arg11[%c2_89, %c0_90, %c0_91, %c0_92] : memref<3x4x8x8xf32, #tpu.memory_space<vmem>>, vector<1x4x8x8xf32>
    %199 = vector.shape_cast %198 : vector<1x4x8x8xf32> to vector<4x8x8xf32>
    %200 = vector.shape_cast %197 : vector<4x8x8xf32> to vector<1x4x8x8xf32>
    tpu.vector_store %arg11[%c2_89, %c0_90, %c0_91, %c0_92], %200 {strides = array<i32>} : memref<3x4x8x8xf32, #tpu.memory_space<vmem>>, vector<1x4x8x8xf32>,
    return
  }
  func.func @transform_0(%arg0: i32) -> (i32, i32, i32) {
    %c0_i32 = arith.constant 0 : i32
    %c0_i32_0 = arith.constant 0 : i32
    %c0_i32_1 = arith.constant 0 : i32
    return %arg0, %c0_i32, %c0_i32_0 : i32, i32, i32
  }
  func.func @transform_1(%arg0: i32) -> (i32, i32) {
    %c0_i32 = arith.constant 0 : i32
    %c0_i32_0 = arith.constant 0 : i32
    %c0_i32_1 = arith.constant 0 : i32
    return %c0_i32, %c0_i32_0 : i32, i32
  }
  func.func @transform_2(%arg0: i32) -> (i32, i32, i32) {
    %c0_i32 = arith.constant 0 : i32
    %c0_i32_0 = arith.constant 0 : i32
    %c0_i32_1 = arith.constant 0 : i32
    %c0_i32_2 = arith.constant 0 : i32
    return %c0_i32, %c0_i32_0, %c0_i32_1 : i32, i32, i32
  }
  func.func @transform_3(%arg0: i32) -> (i32, i32, i32) {
    %c0_i32 = arith.constant 0 : i32
    %c0_i32_0 = arith.constant 0 : i32
    %c0_i32_1 = arith.constant 0 : i32
    %c0_i32_2 = arith.constant 0 : i32
    return %c0_i32, %c0_i32_0, %c0_i32_1 : i32, i32, i32
  }
  func.func @transform_4(%arg0: i32) -> (i32, i32) {
    %c0_i32 = arith.constant 0 : i32
    %c0_i32_0 = arith.constant 0 : i32
    %c0_i32_1 = arith.constant 0 : i32
    return %c0_i32, %c0_i32_0 : i32, i32
  }
  func.func @transform_5(%arg0: i32) -> (i32, i32) {
    %c0_i32 = arith.constant 0 : i32
    %c0_i32_0 = arith.constant 0 : i32
    %c0_i32_1 = arith.constant 0 : i32
    return %c0_i32, %c0_i32_0 : i32, i32
  }
  func.func @transform_6(%arg0: i32) -> (i32, i32) {
    %c0_i32 = arith.constant 0 : i32
    %c0_i32_0 = arith.constant 0 : i32
    %c0_i32_1 = arith.constant 0 : i32
    return %c0_i32, %c0_i32_0 : i32, i32
  }
  func.func @transform_7(%arg0: i32) -> (i32, i32) {
    %c0_i32 = arith.constant 0 : i32
    %c0_i32_0 = arith.constant 0 : i32
    %c0_i32_1 = arith.constant 0 : i32
    return %c0_i32, %c0_i32_0 : i32, i32
  }
  func.func @transform_8(%arg0: i32) -> (i32, i32) {
    %c0_i32 = arith.constant 0 : i32
    %c0_i32_0 = arith.constant 0 : i32
    %c0_i32_1 = arith.constant 0 : i32
    return %c0_i32, %c0_i32_0 : i32, i32
  }
  func.func @transform_9(%arg0: i32) -> (i32, i32) {
    %c0_i32 = arith.constant 0 : i32
    %c0_i32_0 = arith.constant 0 : i32
    %c0_i32_1 = arith.constant 0 : i32
    return %c0_i32, %c0_i32_0 : i32, i32
  }
  func.func @transform_10(%arg0: i32) -> (i32, i32, i32, i32) {
    %c0_i32 = arith.constant 0 : i32
    %c0_i32_0 = arith.constant 0 : i32
    %c0_i32_1 = arith.constant 0 : i32
    %c0_i32_2 = arith.constant 0 : i32
    return %c0_i32, %arg0, %c0_i32_0, %c0_i32_1 : i32, i32, i32, i32
  }
}

</mosaic_0001>

<bundles_post_ra>
// kernel: tpu_custom_call.1
= control target key start
LH: loop header
LB: loop body
LE: loop exit
PB: predicated region body
PF: predicated region fallthrough
CT: control target
= control target key end

     0   :  { %15 = vsyncpa [#allocation3], 0  ;;  %s5230_s0 = inlined_call_operand.vmem [shape: f32[4,8,8], index: 0, kind: input, shape index: {}]   ;;  %s5231_s1 = inlined_call_operand.vmem [shape: f32[8,32], index: 1, kind: input, shape index: {}]   ;;  %s5232_s2 = inlined_call_operand.hbm [shape: f32[4,32,32], index: 2, kind: input, shape index: {}]   ;;  %s5233_s3 = inlined_call_operand.vmem [shape: f32[5,1,32], index: 3, kind: input, shape index: {}]   ;;  %s5234_s4 = inlined_call_operand.vmem [shape: f32[2,2], index: 4, kind: input, shape index: {}]   ;;  %s5235_s5 = inlined_call_operand.vmem [shape: f32[32,64], index: 5, kind: input, shape index: {}]   ;;  %s5236_s6 = inlined_call_operand.vmem [shape: f32[1,64], index: 6, kind: input, shape index: {}]   ;;  %s5237_s7 = inlined_call_operand.vmem [shape: f32[64,16], index: 7, kind: input, shape index: {}]   ;;  %s5238_s8 = inlined_call_operand.vmem [shape: f32[1,16], index: 8, kind: input, shape index: {}]   ;;  %s5239_s9 = inlined_call_operand.vmem [shape: f32[8,8], index: 9, kind: input, shape index: {}]   ;;  %s5240_s10 = inlined_call_operand.hbm [shape: f32[3,4,8,8], index: 10, kind: output, shape index: {}]  }
   0x1   :  { %16 = vsyncpa [#allocation5], 0 }
   0x2   :  { %17 = vsyncpa [#allocation4], 0  ;;  %s4388_s13 = smov [#allocation2]   ;;  %s42_s17 = sshll.u32 %s5234_s4, 4  ;;  %s43_s17 = int_to_ptr.vmem [resolvable:$true] %s42_s17 }
   0x3   :  { %s27_s14 = sshll.u32 %s4388_s13, 4  ;;  %s4326_s20 = scalar_lea.hbm %s5232_s2, 2048  ;;  %s28_s14 = int_to_ptr.vmem [resolvable:$true] %s27_s14 }
   0x4   :  { %p4327_p0 = scmp.ne.s32.totalorder %s5232_s2, %s4326_s20  ;;  %p4330_p1 = scmp.lt.u32.totalorder %s4326_s20, %s5232_s2 }
   0x6   :  { %p4332_p2 = pnand %p4330_p1, %p4327_p0 }
   0x8   :  { %4335 = shalt.err (!%p4332_p2)
}
   0x9   :  { %s4336_s25 = scalar_lea.vmem %s28_s14, 2048  ;;  %p4341_p4 = scmp.lt.s32.totalorder %s28_s14, %s28_s14 }
   0xa   :  { %p4337_p3 = scmp.ne.s32.totalorder %s28_s14, %s4336_s25  ;;  %p4342_p5 = scmp.lt.s32.totalorder %s4336_s25, %s4336_s25 }
   0xc   :  { %p4343_p6 = por %p4342_p5, %p4341_p4 }
   0xe   :  { %p4344_p7 = pnand %p4343_p6, %p4337_p3 }
  0x10   :  { %4347 = shalt.err (!%p4344_p7)
}
  0x11   :  { %s4389_s4 = smov 128   ;;  %s4390_s26 = smov 8  }
  0x12   :  { %33 = dma.hbm_to_vmem [thread:$0]  %s5232_s2, 2048, %s28_s14, [#allocation3], %s4389_s4, %s4389_s4, %s4390_s26  }
  0x13   :  { %s4348_s29 = scalar_lea.vmem %s43_s17, 32  ;;  %p4353_p9 = scmp.lt.s32.totalorder %s43_s17, %s43_s17 }
  0x14   :  { %p4349_p8 = scmp.ne.s32.totalorder %s43_s17, %s4348_s29  ;;  %p4354_p10 = scmp.lt.s32.totalorder %s4348_s29, %s4348_s29 }
  0x16   :  { %p4355_p11 = por %p4354_p10, %p4353_p9 }
  0x18   :  { %p4356_p12 = pnand %p4355_p11, %p4349_p8 }
  0x1a   :  { %4359 = shalt.err (!%p4356_p12)
}
  0x1b   :  { %s4391_s30 = smov [#allocation6]  }
  0x1c   :  { %45 = dma.vmem_to_smem %s43_s17, 32, %s4391_s30, [#allocation5]  }
  0x1d   :  { %4382 = dma.done.wait [#allocation3], 2048  }
  0x1e   :  { %4383 = vsyncadd [#allocation3], 4294965248 }
  0x1f   :  { %4384 = dma.done.wait [#allocation5], 32  }
  0x20   :  { %4385 = vsyncadd [#allocation5], 4294967264 }
  0x21   :  { %62 = sfence }
  0x22   :  { %v71_v0 = vlaneseq  ;;  %v63_v1 = vld [vmem:[%s5230_s0] sm:$0xff]  ;;  %v64_v4 = vld [vmem:[%s5230_s0 + $0x8] sm:$0xff]  ;;  %v65_v5 = vld [vmem:[%s5230_s0 + $0x10] sm:$0xff]  ;;  %vm125_vm0 = vcmask 31744   ;;  %v4392_v16 = vmov 0.0   ;;  %vm235_vm7 = vcmask 64512  }
  0x23   :  { %v4481_v6 = vmul.f32 0.1, %v63_v1  ;;  %v66_v7 = vld [vmem:[%s5230_s0 + $0x18] sm:$0xff]  ;;  %v4496_v12 = vmul.f32 0.1, %v64_v4  ;;  %vm4512_vm10 = vmpackc.low %vm125_vm0, %vm125_vm0  ;;  %s3450_s21 = sld [smem:[#allocation6 + $0x80]] }
  0x24   :  { %v4471_v2 = vand.u32 127, %v71_v0  ;;  %v4473_v3 = vshrl.u32 %v71_v0, 7  ;;  %v4500_v13 = vmul.f32 0.1, %v65_v5  ;;  %v4503_v15 = vmul.f32 0.1, %v66_v7 }
  0x25   :  { %s1760_s22 = sld [smem:[#allocation6]]  ;;  %s3433_s23 = sld [smem:[#allocation6 + $0x1]] }
  0x26   :  { %v4487_v8 = vadd.s32 8, %v4473_v3  ;;  %v103_v9 = vmul.u32 8, %v4471_v2  ;;  %v4491_v10 = vadd.s32 16, %v4473_v3  ;;  %v4494_v11 = vadd.s32 24, %v4473_v3  ;;  %s3451_s24 = sld [smem:[#allocation6 + $0x81]] }
  0x27   :  { %vm76_vm1 = vcmp.ge.s32.totalorder %v4471_v2, 1  ;;  %vm77_vm2 = vcmp.le.s32.totalorder %v4471_v2, 3 }
  0x28   :  { %vm104_vm3 = vcmp.ge.s32.totalorder %v4473_v3, %v103_v9  ;;  %v108_v14 = vadd.s32 8, %v103_v9  ;;  %vm78_vm4 = vmand %vm76_vm1, %vm77_vm2  ;;  %vm105_vm5 = vcmp.ge.s32.totalorder %v4487_v8, %v103_v9  ;;  %vm106_vm6 = vcmp.ge.s32.totalorder %v4491_v10, %v103_v9 }
  0x29   :  { %v3410_v17 = vsel %vm78_vm4, 1.0, %v4392_v16  ;;  %vm107_vm11 = vcmp.ge.s32.totalorder %v4494_v11, %v103_v9  ;;  %vm82_vm4 = vcmp.le.s32.totalorder %v4471_v2, 7 }
  0x2a   :  { %vm109_vm8 = vcmp.lt.s32.totalorder %v4473_v3, %v108_v14  ;;  %vm110_vm9 = vcmp.lt.s32.totalorder %v4487_v8, %v108_v14  ;;  %vm111_vm12 = vcmp.lt.s32.totalorder %v4491_v10, %v108_v14  ;;  %vm112_vm14 = vcmp.lt.s32.totalorder %v4494_v11, %v108_v14 }
  0x2b   :  { %vm113_vm13 = vmand %vm104_vm3, %vm109_vm8  ;;  %v231_v19 = vmul.f32 %v3410_v17, %v4481_v6  ;;  %v232_v20 = vmul.f32 %v3410_v17, %v4496_v12  ;;  %v233_v21 = vmul.f32 %v3410_v17, %v4500_v13  ;;  %v234_v23 = vmul.f32 %v3410_v17, %v4503_v15 }
  0x2c   :  { %vm114_vm15 = vmand %vm105_vm5, %vm110_vm9  ;;  %v3416_v22 = vsel %vm113_vm13, 1.0, %v4392_v16  ;;  %vm81_vm3 = vcmp.ge.s32.totalorder %v4471_v2, 5  ;;  %vm866_vm8 = vcmask 261120   ;;  %vm94_vm9 = vcmp.eq.s32.totalorder %v4494_v11, %v4471_v2  ;;  %v3428_v11 = vld [vmem:[%s5233_s3] ss:$0 sm:$0xff] }
  0x2d   :  { %v3417_v24 = vsel %vm114_vm15, 1.0, %v4392_v16  ;;  %vm115_vm1 = vmand %vm106_vm6, %vm111_vm12  ;;  %v237_v25 = vsel %vm235_vm7, %v231_v19, 0  ;;  %v240_v26 = vsel %vm235_vm7, %v232_v20, 0  ;;  %3693 = vmatprep.mubr.msk.f32.mxu0 %vm125_vm0, %v3416_v22  ;;  %v243_v27 = vsel %vm235_vm7, %v233_v21, 0 }
  0x2e   :  { %v4043_v28 = vpack.c.bf16 %v3417_v24, %v3416_v22  ;;  %vm116_vm2 = vmand %vm107_vm11, %vm112_vm14  ;;  %v3418_v29 = vsel %vm115_vm1, 1.0, %v4392_v16  ;;  %v4536_v30 = vand.u32 4294901760, %v237_v25  ;;  %v4538_v31 = vand.u32 4294901760, %v240_v26 }
  0x2f   :  { %v3419_v32 = vsel %vm116_vm2, 1.0, %v4392_v16  ;;  %v246_v33 = vsel %vm235_vm7, %v234_v23, 0  ;;  %v4553_v37 = vand.u32 4294901760, %v243_v27  ;;  %vm83_vm5 = vmand %vm81_vm3, %vm82_vm4  ;;  %vm91_vm6 = vcmp.eq.s32.totalorder %v4473_v3, %v4471_v2 }
  0x30   :  { %4045 = vmatprep.subr.msk.bf16.mxu0 %vm4512_vm10, %v4043_v28  ;;  %v4049_v34 = vpack.c.bf16 %v3419_v32, %v3418_v29  ;;  %v4545_v35 = vsub.f32 %v237_v25, %v4536_v30  ;;  %v4548_v36 = vsub.f32 %v240_v26, %v4538_v31  ;;  %3721 = vmatprep.mubr.f32.mxu1 %v4536_v30  ;;  %v4555_v38 = vand.u32 4294901760, %v246_v33 }
  0x31   :  { %4048 = vmatpush3.bf16.xpose.msk.msra.mxu0 %vm4512_vm10, %v4043_v28  ;;  %v4568_v41 = vsub.f32 %v243_v27, %v4553_v37  ;;  %v4585_v49 = vpack.c.bf16 %v4538_v31, %v4536_v30  ;;  %v3411_v52 = vsel %vm83_vm5, 1.0, %v4392_v16 }
  0x32   :  { %4051 = vmatprep.subr.msk.bf16.mxu0 %vm4512_vm10, %v4049_v34  ;;  %v4562_v39 = vand.u32 4294901760, %v4545_v35  ;;  %v4565_v40 = vand.u32 4294901760, %v4548_v36  ;;  %v4571_v42 = vsub.f32 %v246_v33, %v4555_v38  ;;  %v944_v56 = vmul.f32 %v3411_v52, %v4481_v6 }
  0x33   :  { %v4578_v45 = vand.u32 4294901760, %v4568_v41  ;;  %v945_v57 = vmul.f32 %v3411_v52, %v4496_v12  ;;  %v4599_v59 = vpack.c.bf16 %v4555_v38, %v4553_v37  ;;  %v4071_v62 = vpack.c.bf16 %v4548_v36, %v4545_v35 }
  0x34   :  { %v320_v43 = vsub.f32 %v4545_v35, %v4562_v39  ;;  %v330_v44 = vsub.f32 %v4548_v36, %v4565_v40  ;;  %v4581_v46 = vand.u32 4294901760, %v4571_v42  ;;  %v949_v60 = vsel %vm235_vm7, %v944_v56, 0 }
  0x35   :  { %v340_v50 = vsub.f32 %v4568_v41, %v4578_v45  ;;  %v952_v61 = vsel %vm235_vm7, %v945_v57, 0  ;;  %v946_v63 = vmul.f32 %v3411_v52, %v4500_v13  ;;  %v4609_v0 = vand.u32 4294901760, %v949_v60 }
  0x36   :  { %v321_v47 = vand.u32 4294901760, %v320_v43  ;;  %v331_v48 = vand.u32 4294901760, %v330_v44  ;;  %v350_v51 = vsub.f32 %v4571_v42, %v4581_v46  ;;  %v4611_v1 = vand.u32 4294901760, %v952_v61 }
  0x37   :  { %v341_v54 = vand.u32 4294901760, %v340_v50  ;;  %v947_v4 = vmul.f32 %v3411_v52, %v4503_v15  ;;  %v955_v5 = vsel %vm235_vm7, %v946_v63, 0  ;;  %v4623_v14 = vsub.f32 %v949_v60, %v4609_v0 }
  0x38   :  { %v4063_v53 = vpack.c.bf16 %v331_v48, %v321_v47  ;;  %v351_v55 = vand.u32 4294901760, %v350_v51  ;;  %v4620_v9 = vpack.c.bf16 %v4611_v1, %v4609_v0  ;;  %v4626_v17 = vsub.f32 %v952_v61, %v4611_v1 }
  0x39   :  { %4054 = vmatpush3.bf16.xpose.msk.msra.mxu0 %vm4512_vm10, %v4049_v34  ;;  %v958_v7 = vsel %vm235_vm7, %v947_v4, 0  ;;  %v4075_v18 = vpack.c.bf16 %v4571_v42, %v4568_v41  ;;  %v4630_v19 = vand.u32 4294901760, %v955_v5  ;;  %v4638_v21 = vand.u32 4294901760, %v4623_v14 }
  0x3a   :  { %4064 = vmatprep.subr.bf16.mxu1 %v4063_v53  ;;  %4056 = vmatprep.subr.bf16.mxu0 %v4585_v49  ;;  %v4067_v58 = vpack.c.bf16 %v351_v55, %v341_v54  ;;  %v4632_v20 = vand.u32 4294901760, %v958_v7  ;;  %v4641_v22 = vand.u32 4294901760, %v4626_v17  ;;  %v4087_v50 = vpack.c.bf16 %v4565_v40, %v4562_v39 }
  0x3b   :  { %4066 = vmatpush3.bf16.xpose.msra.mxu1 %v4063_v53  ;;  %v4654_v26 = vsub.f32 %v955_v5, %v4630_v19  ;;  %v4767_v60 = vsel %vm91_vm6, 1.0, %v4392_v16  ;;  %vm93_vm10 = vcmp.eq.s32.totalorder %v4491_v10, %v4471_v2  ;;  %v4787_v10 = vsel %vm94_vm9, 1.0, %v4392_v16 }
  0x3c   :  { %4068 = vmatprep.subr.bf16.mxu1 %v4067_v58  ;;  %v4646_v23 = vpack.c.bf16 %v4632_v20, %v4630_v19  ;;  %v1042_v25 = vsub.f32 %v4626_v17, %v4641_v22  ;;  %v4657_v27 = vsub.f32 %v958_v7, %v4632_v20  ;;  %v4790_v5 = vsel %vm93_vm10, 1.0, %v4392_v16 }
  0x3e   :  { %v4666_v33 = vand.u32 4294901760, %v4657_v27 }
  0x40   :  { %3694 = vmatmul.mubr.msk.f32.vlgmr.msra.gmra.mrb[0].mxu0 %vm125_vm0, %v3417_v24  ;;  %v1032_v24 = vsub.f32 %v4623_v14, %v4638_v21  ;;  %v1062_v43 = vsub.f32 %v4657_v27, %v4666_v33 }
  0x41   :  { %4058 = vmatpush3.bf16.xpose.msra.mxu0 %v4585_v49  ;;  %3696 = vmatprep.mubr.msk.f32.mxu0 %vm125_vm0, %v3418_v29  ;;  %v1043_v29 = vand.u32 4294901760, %v1042_v25 }
  0x42   :  { %4060 = vmatprep.subr.bf16.mxu0 %v4599_v59  ;;  %v1033_v28 = vand.u32 4294901760, %v1032_v24 }
  0x43   :  { %4070 = vmatpush3.bf16.xpose.msra.mxu1 %v4067_v58 }
  0x44   :  { %4072 = vmatprep.subr.bf16.mxu1 %v4071_v62  ;;  %3697 = vmatmul.mubr.msk.f32.gmra.mrb[2].mxu0 %vm125_vm0, %v3419_v32  ;;  %v4663_v32 = vand.u32 4294901760, %v4654_v26  ;;  %v4111_v34 = vpack.c.bf16 %v1043_v29, %v1033_v28  ;;  %vm92_vm0 = vcmp.eq.s32.totalorder %v4487_v8, %v4471_v2 }
  0x45   :  { %3707 = vmatprep.mubr.f32.mxu0 %v321_v47  ;;  %v1063_v47 = vand.u32 4294901760, %v1062_v43  ;;  %v4762_v58 = vsel %vm92_vm0, 1.0, %v4392_v16 }
  0x49   :  { %4062 = vmatpush3.bf16.xpose.msra.mxu0 %v4599_v59 }
  0x4a   :  { %3722 = vmatmul.mubr.f32.vlgmr.msra.gmra.mrb[0].mxu1 %v4538_v31  ;;  %4104 = vmatprep.subr.bf16.mxu0 %v4620_v9 }
  0x4b   :  { %4074 = vmatpush3.bf16.xpose.msra.mxu1 %v4071_v62  ;;  %3724 = vmatprep.mubr.f32.mxu1 %v4553_v37 }
  0x4c   :  { %4076 = vmatprep.subr.bf16.mxu1 %v4075_v18 }
  0x4e   :  { %3725 = vmatmul.mubr.f32.gmra.mrb[2].mxu1 %v4555_v38 }
  0x4f   :  { %3735 = vmatprep.mubr.f32.mxu1 %v4545_v35  ;;  %v1052_v35 = vsub.f32 %v4654_v26, %v4663_v32 }
  0x50   :  { %3708 = vmatmul.mubr.f32.vlgmr.msra.gmra.mrb[4].mxu0 %v331_v48 }
  0x51   :  { %4106 = vmatpush3.bf16.xpose.msra.mxu0 %v4620_v9  ;;  %3710 = vmatprep.mubr.f32.mxu0 %v341_v54  ;;  %v1053_v44 = vand.u32 4294901760, %v1052_v35 }
  0x52   :  { %4108 = vmatprep.subr.bf16.mxu0 %v4646_v23 }
  0x53   :  { %4078 = vmatpush3.bf16.xpose.msra.mxu1 %v4075_v18  ;;  %v4115_v48 = vpack.c.bf16 %v1063_v47, %v1053_v44 }
  0x54   :  { %4080 = vmatprep.subr.bf16.mxu1 %v4585_v49  ;;  %3711 = vmatmul.mubr.f32.gmra.mrb[6].mxu0 %v351_v55 }
  0x55   :  { %3791 = vmatprep.mubr.f32.mxu0 %v1033_v28 }
  0x59   :  { %4110 = vmatpush3.bf16.xpose.msra.mxu0 %v4646_v23 }
  0x5a   :  { %3736 = vmatmul.mubr.f32.vlgmr.msra.gmra.mrb[0].mxu1 %v4548_v36  ;;  %4112 = vmatprep.subr.bf16.mxu0 %v4111_v34  ;;  %v4119_v36 = vpack.c.bf16 %v4626_v17, %v4623_v14 }
  0x5b   :  { %4082 = vmatpush3.bf16.xpose.msra.mxu1 %v4585_v49  ;;  %3738 = vmatprep.mubr.f32.mxu1 %v4568_v41  ;;  %v4091_v41 = vpack.c.bf16 %v4581_v46, %v4578_v45 }
  0x5c   :  { %4084 = vmatprep.subr.bf16.mxu1 %v4599_v59 }
  0x5e   :  { %3739 = vmatmul.mubr.f32.gmra.mrb[2].mxu1 %v4571_v42  ;;  %v4139_v42 = vpack.c.bf16 %v4666_v33, %v4663_v32 }
  0x5f   :  { %3749 = vmatprep.mubr.f32.mxu1 %v4562_v39  ;;  %v4123_v39 = vpack.c.bf16 %v4657_v27, %v4654_v26 }
  0x60   :  { %3792 = vmatmul.mubr.f32.vlgmr.msra.gmra.mrb[8].mxu0 %v1043_v29 }
  0x61   :  { %4114 = vmatpush3.bf16.xpose.msra.mxu0 %v4111_v34  ;;  %3794 = vmatprep.mubr.f32.mxu0 %v1053_v44 }
  0x62   :  { %4116 = vmatprep.subr.bf16.mxu0 %v4115_v48 }
  0x63   :  { %4086 = vmatpush3.bf16.xpose.msra.mxu1 %v4599_v59 }
  0x64   :  { %4088 = vmatprep.subr.bf16.mxu1 %v4087_v50  ;;  %3795 = vmatmul.mubr.f32.gmra.mrb[10].mxu0 %v1063_v47 }
  0x65   :  { %3805 = vmatprep.mubr.f32.mxu0 %v4609_v0 }
  0x69   :  { %4118 = vmatpush3.bf16.xpose.msra.mxu0 %v4115_v48 }
  0x6a   :  { %3750 = vmatmul.mubr.f32.vlgmr.msra.gmra.mrb[0].mxu1 %v4565_v40  ;;  %4120 = vmatprep.subr.bf16.mxu0 %v4119_v36  ;;  %v1651_v40 = vld [vmem:[%s5231_s1] sm:$0xff] }
  0x6b   :  { %4090 = vmatpush3.bf16.xpose.msra.mxu1 %v4087_v50  ;;  %3752 = vmatprep.mubr.f32.mxu1 %v4578_v45 }
  0x6c   :  { %4092 = vmatprep.subr.bf16.mxu1 %v4091_v41 }
  0x6e   :  { %3753 = vmatmul.mubr.f32.gmra.mrb[2].mxu1 %v4581_v46 }
  0x6f   :  { %3763 = vmatprep.mubr.f32.mxu1 %v4536_v30 }
  0x70   :  { %3806 = vmatmul.mubr.f32.vlgmr.msra.gmra.mrb[8].mxu0 %v4611_v1 }
  0x71   :  { %4122 = vmatpush3.bf16.xpose.msra.mxu0 %v4119_v36  ;;  %3808 = vmatprep.mubr.f32.mxu0 %v4630_v19 }
  0x72   :  { %4124 = vmatprep.subr.bf16.mxu0 %v4123_v39 }
  0x73   :  { %4094 = vmatpush3.bf16.xpose.msra.mxu1 %v4091_v41 }
  0x74   :  { %4096 = vmatprep.subr.bf16.mxu1 %v4585_v49  ;;  %3809 = vmatmul.mubr.f32.gmra.mrb[10].mxu0 %v4632_v20 }
  0x75   :  { %3819 = vmatprep.mubr.f32.mxu0 %v4623_v14 }
  0x79   :  { %4126 = vmatpush3.bf16.xpose.msra.mxu0 %v4123_v39 }
  0x7a   :  { %3764 = vmatmul.mubr.f32.vlgmr.msra.gmra.mrb[0].mxu1 %v4538_v31  ;;  %4128 = vmatprep.subr.bf16.mxu0 %v4620_v9 }
  0x7b   :  { %4098 = vmatpush3.bf16.xpose.msra.mxu1 %v4585_v49  ;;  %3766 = vmatprep.mubr.f32.mxu1 %v4553_v37 }
  0x7c   :  { %4100 = vmatprep.subr.bf16.mxu1 %v4599_v59 }
  0x7e   :  { %3767 = vmatmul.mubr.f32.gmra.mrb[2].mxu1 %v4555_v38 }
  0x7f   :  { %3777 = vmatprep.mubr.f32.mxu1 %v4536_v30  ;;  %v4135_v30 = vpack.c.bf16 %v4641_v22, %v4638_v21 }
  0x80   :  { %3820 = vmatmul.mubr.f32.vlgmr.msra.gmra.mrb[8].mxu0 %v4626_v17 }
  0x81   :  { %4130 = vmatpush3.bf16.xpose.msra.mxu0 %v4620_v9  ;;  %3822 = vmatprep.mubr.f32.mxu0 %v4654_v26 }
  0x82   :  { %4132 = vmatprep.subr.bf16.mxu0 %v4646_v23 }
  0x83   :  { %4102 = vmatpush3.bf16.xpose.msra.mxu1 %v4599_v59 }
  0x84   :  { %3867 = vmatprep.subr.mxu1 %v1651_v40  ;;  %3823 = vmatmul.mubr.f32.gmra.mrb[10].mxu0 %v4657_v27 }
  0x85   :  { %3833 = vmatprep.mubr.f32.mxu0 %v4638_v21 }
  0x89   :  { %4134 = vmatpush3.bf16.xpose.msra.mxu0 %v4646_v23 }
  0x8a   :  { %3778 = vmatmul.mubr.f32.vlgmr.msra.gmra.mrb[0].mxu1 %v4538_v31  ;;  %4136 = vmatprep.subr.bf16.mxu0 %v4135_v30  ;;  %v1779_v31 = vld [vmem:[#allocation2 + $0x18] sm:$0xff] }
  0x8b   :  { %3868 = vmatpush3.msra.mxu1 %v1651_v40  ;;  %3780 = vmatprep.mubr.f32.mxu1 %v4553_v37 }
  0x8e   :  { %3781 = vmatmul.mubr.f32.gmra.mrb[2].mxu1 %v4555_v38 }
  0x8f   :  { %3869 = vmatprep.mubr.msk.f32.mxu1 %vm235_vm7, %v4481_v6  ;;  %v1776_v6 = vld [vmem:[#allocation2] sm:$0xff] }
  0x90   :  { %3834 = vmatmul.mubr.f32.vlgmr.msra.gmra.mrb[8].mxu0 %v4641_v22 }
  0x91   :  { %4138 = vmatpush3.bf16.xpose.msra.mxu0 %v4135_v30  ;;  %3836 = vmatprep.mubr.f32.mxu0 %v4663_v32 }
  0x92   :  { %3870 = vmatmul.mubr.msk.f32.vlgmr.msra.gmra.mrb[4].mxu1 %vm235_vm7, %v4496_v12  ;;  %4140 = vmatprep.subr.bf16.mxu0 %v4139_v42  ;;  %v1777_v12 = vld [vmem:[#allocation2 + $0x8] sm:$0xff] }
  0x93   :  { %3872 = vmatprep.mubr.msk.f32.mxu1 %vm235_vm7, %v4500_v13  ;;  %v4151_v13 = vpack.c.bf16 %v1777_v12, %v1776_v6 }
  0x94   :  { %3837 = vmatmul.mubr.f32.gmra.mrb[10].mxu0 %v4666_v33 }
  0x95   :  { %3847 = vmatprep.mubr.f32.mxu0 %v4609_v0  ;;  %4152 = vmatprep.subr.bf16.mxu1 %v4151_v13 }
  0x96   :  { %3873 = vmatmul.mubr.msk.f32.gmra.mrb[6].mxu1 %vm235_vm7, %v4503_v15  ;;  %v1778_v15 = vld [vmem:[#allocation2 + $0x10] sm:$0xff] }
  0x97   :  { %4154 = vmatpush3.bf16.msra.mxu1 %v4151_v13  ;;  %v4155_v37 = vpack.c.bf16 %v1779_v31, %v1778_v15  ;;  %v1987_v13 = vld [vmem:[#allocation2 + $0x20] sm:$0xff]  ;;  %v1988_v15 = vld [vmem:[#allocation2 + $0x28] sm:$0xff]  ;;  %v1989_v31 = vld [vmem:[#allocation2 + $0x30] sm:$0xff] }
  0x99   :  { %4142 = vmatpush3.bf16.xpose.msra.mxu0 %v4139_v42  ;;  %4156 = vmatprep.subr.bf16.mxu1 %v4155_v37 }
  0x9a   :  { %4144 = vmatprep.subr.bf16.mxu0 %v4620_v9 }
  0x9b   :  { %4158 = vmatpush3.bf16.msra.mxu1 %v4155_v37  ;;  %v4167_v37 = vpack.c.bf16 %v1988_v15, %v1987_v13 }
  0x9d   :  { %4168 = vmatprep.subr.bf16.mxu1 %v4167_v37 }
  0xa0   :  { %3848 = vmatmul.mubr.f32.vlgmr.msra.gmra.mrb[8].mxu0 %v4611_v1 }
  0xa1   :  { %4146 = vmatpush3.bf16.xpose.msra.mxu0 %v4620_v9  ;;  %3850 = vmatprep.mubr.f32.mxu0 %v4630_v19 }
  0xa2   :  { %4148 = vmatprep.subr.bf16.mxu0 %v4646_v23 }
  0xa4   :  { %3851 = vmatmul.mubr.f32.gmra.mrb[10].mxu0 %v4632_v20 }
  0xa5   :  { %3861 = vmatprep.mubr.f32.mxu0 %v4609_v0 }
  0xa9   :  { %4150 = vmatpush3.bf16.xpose.msra.mxu0 %v4646_v23 }
  0xb0   :  { %3862 = vmatmul.mubr.f32.vlgmr.msra.gmra.mrb[8].mxu0 %v4611_v1 }
  0xb1   :  { %3864 = vmatprep.mubr.f32.mxu0 %v4630_v19 }
  0xb4   :  { %3865 = vmatmul.mubr.f32.gmra.mrb[10].mxu0 %v4632_v20 }
 0x113   :  { %v4747_v38 = vpop.f32.mrb[0].mxu0 }
 0x114   :  { %v4749_v45 = vpop.f32.mrb[1].mxu0 }
 0x117   :  { %v4751_v46 = vpop.f32.mrb[2].mxu0 }
 0x118   :  { %v4753_v49 = vpop.f32.mrb[3].mxu0 }
 0x123   :  { %v3709_v51 = vpop.f32.mrb[4].mxu0 }
 0x124   :  { %v323_v52 = vpop.f32.mrb[5].mxu0 }
 0x127   :  { %v3712_v53 = vpop.f32.mrb[6].mxu0 }
 0x128   :  { %v343_v54 = vpop.f32.mrb[7].mxu0 }
 0x15d   :  { %v3779_v55 = vpop.f32.mrb[0].mxu1 }
 0x15e   :  { %v4759_v56 = vadd.f32 %v3779_v55, %v3709_v51  ;;  %v840_v57 = vpop.f32.mrb[1].mxu1  ;;  %v1990_v51 = vld [vmem:[#allocation2 + $0x38] sm:$0xff] }
 0x15f   :  { %v4764_v59 = vadd.f32 %v840_v57, %v323_v52  ;;  %v4171_v52 = vpack.c.bf16 %v1990_v51, %v1989_v31 }
 0x160   :  { %v863_v61 = vmul.f32 %v4759_v56, %v4762_v58 }
 0x161   :  { %v3782_v3 = vpop.f32.mrb[2].mxu1  ;;  %v862_v8 = vmul.f32 %v4764_v59, %v4767_v60 }
 0x162   :  { %v4777_v62 = vadd.f32 %v3782_v3, %v3712_v53  ;;  %v852_v63 = vpop.f32.mrb[3].mxu1  ;;  %v870_v0 = vsel %vm866_vm8, %v863_v61, 0.0 }
 0x163   :  { %v4780_v1 = vadd.f32 %v852_v63, %v343_v54  ;;  %871 = vadd.xlane.f32.xlu1 %v870_v0  ;;  %v867_v4 = vsel %vm866_vm8, %v862_v8, 0.0  ;;  %v893_v63 = vmul.f32 2.0, %v4759_v56 }
 0x164   :  { %868 = vadd.xlane.f32.xlu0 %v867_v4  ;;  %v879_v7 = vadd.f32 %v870_v0, %v867_v4  ;;  %v865_v17 = vmul.f32 %v4777_v62, %v4787_v10 }
 0x165   :  { %v3871_v9 = vpop.f32.mrb[4].mxu1  ;;  %v864_v14 = vmul.f32 %v4780_v1, %v4790_v5 }
 0x166   :  { %v4796_v18 = vadd.f32 %v3871_v9, %v3428_v11  ;;  %v1737_v19 = vpop.f32.mrb[5].mxu1  ;;  %v876_v24 = vsel %vm866_vm8, %v865_v17, 0.0  ;;  %v905_v9 = vmul.f32 1e-06, %v4762_v58  ;;  %v904_v17 = vmul.f32 1e-06, %v4767_v60 }
 0x167   :  { %v4798_v20 = vadd.f32 %v3428_v11, %v1737_v19  ;;  %v873_v21 = vsel %vm866_vm8, %v864_v14, 0.0 }
 0x168   :  { %v880_v22 = vadd.f32 %v879_v7, %v873_v21  ;;  %v1757_v25 = vmax.f32 %v4796_v18, 0.0 }
 0x169   :  { %v1756_v16 = vmax.f32 %v4798_v20, 0.0  ;;  %v3874_v23 = vpop.f32.mrb[6].mxu1 }
 0x16a   :  { %v4804_v26 = vadd.f32 %v3874_v23, %v3428_v11  ;;  %v1747_v27 = vpop.f32.mrb[7].mxu1  ;;  %v881_v28 = vadd.f32 %v880_v22, %v876_v24 }
 0x16b   :  { %v4806_v29 = vadd.f32 %v3428_v11, %v1747_v27  ;;  %3883 = vmatprep.mubr.msk.f32.mxu1 %vm866_vm8, %v1756_v16  ;;  %v892_v11 = vmul.f32 2.0, %v4764_v59  ;;  %v224_v27 = vsub.f32 1.0, %v4762_v58  ;;  %v223_v59 = vsub.f32 1.0, %v4767_v60 }
 0x16c   :  { %3884 = vmatmul.mubr.msk.f32.vlgmr.msra.gmra.mrb[8].mxu1 %vm866_vm8, %v1757_v25  ;;  %v1759_v33 = vmax.f32 %v4804_v26, 0.0  ;;  %v882_v53 = vrot.slane %v881_v28, 4 }
 0x16d   :  { %v1758_v32 = vmax.f32 %v4806_v29, 0.0  ;;  %4170 = vmatpush3.bf16.msra.mxu1 %v4167_v37  ;;  %v2336_v29 = vld [vmem:[#allocation2 + $0x60] sm:$0xff] }
 0x16e   :  { %4172 = vmatprep.subr.bf16.mxu1 %v4171_v52  ;;  %v883_v54 = vadd.f32 %v882_v53, %v881_v28 }
 0x16f   :  { %3886 = vmatprep.mubr.msk.f32.mxu1 %vm866_vm8, %v1758_v32 }
 0x170   :  { %3887 = vmatmul.mubr.msk.f32.gmra.mrb[10].mxu1 %vm866_vm8, %v1759_v33  ;;  %v884_v55 = vrot.slane %v883_v54, 2 }
 0x171   :  { %4174 = vmatpush3.bf16.msra.mxu1 %v4171_v52 }
 0x172   :  { %v885_v57 = vadd.f32 %v884_v55, %v883_v54 }
 0x174   :  { %v886_v61 = vrot.slane %v885_v57, 1 }
 0x176   :  { %v4842_v3 = vadd.f32 %v886_v61, %v885_v57 }
 0x183   :  { %v4822_v34 = vpop.f32.mrb[8].mxu0 }
 0x184   :  { %v1575_v35 = vmul.f32 %v4822_v34, %v4762_v58  ;;  %v4826_v43 = vpop.f32.mrb[9].mxu0  ;;  %v1604_v53 = vmul.f32 2.0, %v4822_v34 }
 0x185   :  { %v1574_v44 = vmul.f32 %v4767_v60, %v4826_v43  ;;  %v1603_v57 = vmul.f32 2.0, %v4826_v43 }
 0x186   :  { %v1581_v47 = vsel %vm866_vm8, %v1575_v35, 0.0 }
 0x187   :  { %1582 = vadd.xlane.f32.xlu1 %v1581_v47  ;;  %v4831_v48 = vpop.f32.mrb[10].mxu0  ;;  %v1578_v50 = vsel %vm866_vm8, %v1574_v44, 0.0 }
 0x188   :  { %1579 = vadd.xlane.f32.xlu0 %v1578_v50  ;;  %v1590_v36 = vadd.f32 %v1581_v47, %v1578_v50  ;;  %v4834_v41 = vpop.f32.mrb[11].mxu0  ;;  %v1577_v39 = vmul.f32 %v4831_v48, %v4787_v10  ;;  %v4853_v47 = vmul.f32 %v4747_v38, %v224_v27  ;;  %v4856_v50 = vmul.f32 %v223_v59, %v4749_v45 }
 0x189   :  { %v1576_v40 = vmul.f32 %v4790_v5, %v4834_v41  ;;  %v1606_v27 = vmul.f32 2.0, %v4831_v48 }
 0x18a   :  { %v1587_v6 = vsel %vm866_vm8, %v1577_v39, 0.0 }
 0x18b   :  { %v1584_v30 = vsel %vm866_vm8, %v1576_v40, 0.0 }
 0x18c   :  { %1585 = vadd.xlane.f32.xlu1 %v1584_v30  ;;  %v1591_v42 = vadd.f32 %v1590_v36, %v1584_v30  ;;  %874 = vadd.xlane.f32.xlu0 %v873_v21  ;;  %v4858_v30 = vstv %s3450_s21 }
 0x18e   :  { %v1592_v12 = vadd.f32 %v1591_v42, %v1587_v6 }
 0x190   :  { %1588 = vadd.xlane.f32.xlu1 %v1587_v6  ;;  %877 = vadd.xlane.f32.xlu0 %v876_v24  ;;  %v1593_v56 = vrot.slane %v1592_v12, 4 }
 0x192   :  { %v1594_v35 = vadd.f32 %v1593_v56, %v1592_v12 }
 0x194   :  { %v1595_v60 = vrot.slane %v1594_v35, 2 }
 0x196   :  { %v1596_v31 = vadd.f32 %v1595_v60, %v1594_v35 }
 0x198   :  { %v1597_v37 = vrot.slane %v1596_v31, 1 }
 0x19a   :  { %v1598_v51 = vadd.f32 %v1597_v37, %v1596_v31 }
 0x1f0   :  { %v872_v8 = vpop.xlane.xlu1 %871 }
 0x1f1   :  { %v889_v0 = vadd.f32 %v4842_v3, %v872_v8  ;;  %v869_v4 = vpop.xlane.xlu0 %868 }
 0x1f2   :  { %v888_v7 = vadd.f32 %v4842_v3, %v869_v4 }
 0x1f3   :  { %v897_v14 = vsub.f32 %v889_v0, %v893_v63  ;;  %v894_v0 = vmul.f32 2.0, %v4780_v1 }
 0x1f4   :  { %v896_v19 = vsub.f32 %v888_v7, %v892_v11 }
 0x1f5   :  { %v901_v21 = vmax.f32 %v897_v14, 0.0  ;;  %v1605_v14 = vmul.f32 2.0, %v4834_v41 }
 0x1f6   :  { %v900_v22 = vmax.f32 %v896_v19, 0.0 }
 0x1f7   :  { %v909_v23 = vadd.f32 %v905_v9, %v901_v21 }
 0x1f8   :  { %v908_v24 = vadd.f32 %v904_v17, %v900_v22 }
 0x1f9   :  { %4290 = vrsqrt.f32 %v909_v23  ;;  %vm921_vm11 = vcmp.eq.f32.partialorder %v909_v23, inf  ;;  %v924_v39 = vand.u32 2147483648, %v909_v23  ;;  %vm923_vm13 = vcmp.eq.f32.partialorder %v909_v23, 0.0 }
 0x1fa   :  { %4292 = vrsqrt.f32 %v908_v24  ;;  %vm914_vm12 = vcmp.eq.f32.partialorder %v908_v24, inf  ;;  %v917_v42 = vand.u32 2147483648, %v908_v24  ;;  %vm916_vm14 = vcmp.eq.f32.partialorder %v908_v24, 0.0 }
 0x203   :  { %v4291_v28 = vpop.eup %4290 }
 0x204   :  { %v4293_v44 = vpop.eup %4292  ;;  %v920_v36 = vmul.f32 %v4291_v28, %v909_v23 }
 0x205   :  { %v913_v40 = vmul.f32 %v4293_v44, %v908_v24  ;;  %v895_v44 = vmul.f32 2.0, %v4777_v62 }
 0x206   :  { %v922_v58 = vsel %vm921_vm11, %v909_v23, %v920_v36 }
 0x207   :  { %v915_v6 = vsel %vm914_vm12, %v908_v24, %v913_v40  ;;  %v925_v12 = vsel %vm923_vm13, %v924_v39, %v922_v58  ;;  %v906_v24 = vmul.f32 1e-06, %v4790_v5  ;;  %v907_v39 = vmul.f32 1e-06, %v4787_v10 }
 0x208   :  { %v918_v13 = vsel %vm916_vm14, %v917_v42, %v915_v6  ;;  %v941_v38 = vmul.f32 %v925_v12, %v4853_v47  ;;  %v226_v42 = vsub.f32 1.0, %v4787_v10  ;;  %v225_v58 = vsub.f32 1.0, %v4790_v5 }
 0x209   :  { %v4862_v45 = vmul.f32 %v918_v13, %v4856_v50  ;;  %v4887_v6 = vstv %s1760_s22  ;;  %v4896_v10 = vstv %s3433_s23  ;;  %vm73_vm13 = vcmp.eq.s32.totalorder %v4471_v2, 0  ;;  %s4393_s23 = smov 120  }
 0x20a   :  { %v4865_v15 = vmul.f32 %v4858_v30, %v941_v38  ;;  %v4892_v13 = vmul.f32 %v4751_v46, %v226_v42  ;;  %v229_v31 = vmul.f32 %v225_v58, %v4753_v49  ;;  %vm74_vm14 = vcmp.eq.s32.totalorder %v4471_v2, 4 }
 0x20b   :  { %v1762_v37 = vmul.f32 %v4887_v6, %v4862_v45  ;;  %v2110_v49 = vmul.f32 %v4858_v30, %v4862_v45 }
 0x214   :  { %v1583_v52 = vpop.xlane.xlu1 %1582 }
 0x215   :  { %v1600_v54 = vadd.f32 %v1598_v51, %v1583_v52  ;;  %v1580_v55 = vpop.xlane.xlu0 %1579  ;;  %v4902_v52 = vstv %s3451_s24 }
 0x216   :  { %v1599_v61 = vadd.f32 %v1598_v51, %v1580_v55 }
 0x217   :  { %v1608_v8 = vsub.f32 %v1600_v54, %v1604_v53 }
 0x218   :  { %v1607_v63 = vsub.f32 %v1599_v61, %v1603_v57 }
 0x219   :  { %v1612_v4 = vmax.f32 %v1608_v8, 0.0  ;;  %v1586_v11 = vpop.xlane.xlu1 %1585  ;;  %v875_v7 = vpop.xlane.xlu0 %874 }
 0x21a   :  { %v1611_v19 = vmax.f32 %v1607_v63, 0.0  ;;  %v1601_v21 = vadd.f32 %v1598_v51, %v1586_v11  ;;  %v890_v22 = vadd.f32 %v4842_v3, %v875_v7 }
 0x21b   :  { %v1616_v23 = vadd.f32 %v1612_v4, %v905_v9 }
 0x21c   :  { %v1615_v34 = vadd.f32 %v1611_v19, %v904_v17  ;;  %v1609_v56 = vsub.f32 %v1601_v21, %v1605_v14  ;;  %v898_v43 = vsub.f32 %v890_v22, %v894_v0 }
 0x21d   :  { %4294 = vrsqrt.f32 %v1616_v23  ;;  %v1589_v1 = vpop.xlane.xlu1 %1588  ;;  %v878_v59 = vpop.xlane.xlu0 %877  ;;  %vm1628_vm15 = vcmp.eq.f32.partialorder %v1616_v23, inf  ;;  %v1631_v46 = vand.u32 2147483648, %v1616_v23  ;;  %vm1630_vm3 = vcmp.eq.f32.partialorder %v1616_v23, 0.0 }
 0x21e   :  { %4296 = vrsqrt.f32 %v1615_v34  ;;  %v1613_v28 = vmax.f32 %v1609_v56, 0.0  ;;  %v902_v35 = vmax.f32 %v898_v43, 0.0  ;;  %v1602_v41 = vadd.f32 %v1598_v51, %v1589_v1 }
 0x21f   :  { %v891_v9 = vadd.f32 %v4842_v3, %v878_v59  ;;  %v1763_v51 = vmul.f32 %v4887_v6, %v941_v38  ;;  %vm1621_vm1 = vcmp.eq.f32.partialorder %v1615_v34, inf  ;;  %vm1623_vm2 = vcmp.eq.f32.partialorder %v1615_v34, 0.0 }
 0x220   :  { %v4876_v17 = vadd.f32 %v1613_v28, %v906_v24  ;;  %v4878_v36 = vadd.f32 %v906_v24, %v902_v35  ;;  %v1610_v48 = vsub.f32 %v1602_v41, %v1606_v27  ;;  %v1624_v57 = vand.u32 2147483648, %v1615_v34 }
 0x221   :  { %v899_v40 = vsub.f32 %v891_v9, %v895_v44 }
 0x222   :  { %4298 = vrsqrt.f32 %v4876_v17  ;;  %v1614_v60 = vmax.f32 %v1610_v48, 0.0  ;;  %vm928_vm4 = vcmp.eq.f32.partialorder %v4878_v36, inf  ;;  %vm930_vm5 = vcmp.eq.f32.partialorder %v4878_v36, 0.0 }
 0x223   :  { %4300 = vrsqrt.f32 %v4878_v36  ;;  %v903_v62 = vmax.f32 %v899_v40, 0.0  ;;  %v931_v63 = vand.u32 2147483648, %v4878_v36  ;;  %vm1635_vm0 = vcmp.eq.f32.partialorder %v4876_v17, inf }
 0x224   :  { %v4885_v3 = vadd.f32 %v1614_v60, %v907_v39  ;;  %vm1637_vm6 = vcmp.eq.f32.partialorder %v4876_v17, 0.0  ;;  %v1638_v11 = vand.u32 2147483648, %v4876_v17 }
 0x225   :  { %v4889_v12 = vadd.f32 %v907_v39, %v903_v62 }
 0x226   :  { %4302 = vrsqrt.f32 %v4885_v3  ;;  %vm1642_vm9 = vcmp.eq.f32.partialorder %v4885_v3, inf  ;;  %vm1644_vm10 = vcmp.eq.f32.partialorder %v4885_v3, 0.0 }
 0x227   :  { %v4295_v5 = vpop.eup %4294  ;;  %4304 = vrsqrt.f32 %v4889_v12  ;;  %vm935_vm11 = vcmp.eq.f32.partialorder %v4889_v12, inf  ;;  %vm937_vm12 = vcmp.eq.f32.partialorder %v4889_v12, 0.0 }
 0x228   :  { %v4297_v53 = vpop.eup %4296  ;;  %v1627_v54 = vmul.f32 %v4295_v5, %v1616_v23 }
 0x229   :  { %v1620_v55 = vmul.f32 %v4297_v53, %v1615_v34 }
 0x22a   :  { %v1629_v61 = vsel %vm1628_vm15, %v1616_v23, %v1627_v54  ;;  %v1645_v23 = vand.u32 2147483648, %v4885_v3  ;;  %vm5151_vm15 = vmor %vm73_vm13, %vm74_vm14 }
 0x22b   :  { %v1622_v38 = vsel %vm1621_vm1, %v1615_v34, %v1620_v55  ;;  %v1632_v8 = vsel %vm1630_vm3, %v1631_v46, %v1629_v61  ;;  %v3435_v61 = vld [vmem:[%s5233_s3 + $0x1] ss:$0 sm:$0xff] }
 0x22c   :  { %v4299_v0 = vpop.eup %4298  ;;  %v1625_v4 = vsel %vm1623_vm2, %v1624_v57, %v1622_v38  ;;  %v1648_v45 = vmul.f32 %v1632_v8, %v4853_v47 }
 0x22d   :  { %v4301_v7 = vpop.eup %4300  ;;  %v1647_v14 = vmul.f32 %v1625_v4, %v4856_v50  ;;  %v1634_v19 = vmul.f32 %v4299_v0, %v4876_v17 }
 0x22e   :  { %v1769_v21 = vmul.f32 %v4896_v10, %v1648_v45  ;;  %v927_v22 = vmul.f32 %v4301_v7, %v4878_v36  ;;  %v2117_v47 = vmul.f32 %v4902_v52, %v1648_v45 }
 0x22f   :  { %v1768_v34 = vmul.f32 %v4896_v10, %v1647_v14  ;;  %v1636_v50 = vsel %vm1635_vm0, %v4876_v17, %v1634_v19  ;;  %v2116_v24 = vmul.f32 %v4902_v52, %v1647_v14 }
 0x230   :  { %v4303_v56 = vpop.eup %4302  ;;  %v1773_v43 = vadd.f32 %v1769_v21, %v1763_v51  ;;  %v929_v27 = vsel %vm928_vm4, %v4878_v36, %v927_v22  ;;  %v1639_v1 = vsel %vm1637_vm6, %v1638_v11, %v1636_v50  ;;  %v4933_v59 = vadd.f32 %v2117_v47, %v4865_v15  ;;  %v2125_v47 = vld [vmem:[#allocation2 + $0x40] sm:$0xff] }
 0x231   :  { %v4305_v28 = vpop.eup %4304  ;;  %v1772_v35 = vadd.f32 %v1768_v34, %v1762_v37  ;;  %v932_v41 = vsel %vm930_vm5, %v931_v63, %v929_v27  ;;  %v1649_v44 = vmul.f32 %v1639_v1, %v229_v31  ;;  %v1641_v9 = vmul.f32 %v4303_v56, %v4885_v3  ;;  %v2126_v34 = vld [vmem:[#allocation2 + $0x48] sm:$0xff]  ;;  %v2128_v56 = vld [vmem:[#allocation2 + $0x58] sm:$0xff]  ;;  %v3449_v1 = vld [vmem:[%s5233_s3 + $0x2] ss:$0 sm:$0xff] }
 0x232   :  { %v942_v39 = vmul.f32 %v932_v41, %v229_v31  ;;  %v934_v48 = vmul.f32 %v4305_v28, %v4889_v12  ;;  %v2120_v40 = vadd.f32 %v2116_v24, %v2110_v49  ;;  %v938_v15 = vand.u32 2147483648, %v4889_v12  ;;  %v2127_v24 = vld [vmem:[#allocation2 + $0x50] sm:$0xff] }
 0x233   :  { %3897 = vmatprep.mubr.msk.f32.mxu0 %vm866_vm8, %v1772_v35  ;;  %v1770_v17 = vmul.f32 %v4896_v10, %v1649_v44  ;;  %v1643_v36 = vsel %vm1642_vm9, %v4885_v3, %v1641_v9  ;;  %v2118_v42 = vmul.f32 %v4902_v52, %v1649_v44  ;;  %v4175_v50 = vpack.c.bf16 %v2126_v34, %v2125_v47  ;;  %v2578_v47 = vld [vmem:[%s5237_s7 + $0x28] sm:$0xff] }
 0x234   :  { %v1764_v58 = vmul.f32 %v4887_v6, %v942_v39  ;;  %v936_v60 = vsel %vm935_vm11, %v4889_v12, %v934_v48  ;;  %v1646_v62 = vsel %vm1644_vm10, %v1645_v23, %v1643_v36  ;;  %v2112_v31 = vmul.f32 %v4858_v30, %v942_v39 }
 0x235   :  { %v939_v5 = vsel %vm937_vm12, %v938_v15, %v936_v60  ;;  %v1650_v37 = vmul.f32 %v1646_v62, %v4892_v13  ;;  %v3453_v60 = vld [vmem:[%s5233_s3 + $0x3] ss:$0 sm:$0xff] }
 0x236   :  { %v1774_v51 = vadd.f32 %v1770_v17, %v1764_v58  ;;  %v943_v53 = vmul.f32 %v939_v5, %v4892_v13  ;;  %v4956_v54 = vadd.f32 %v2118_v42, %v2112_v31  ;;  %v2339_v42 = vld [vmem:[#allocation2 + $0x78] sm:$0xff] }
 0x237   :  { %v1771_v46 = vmul.f32 %v4896_v10, %v1650_v37  ;;  %v2119_v49 = vmul.f32 %v4902_v52, %v1650_v37 }
 0x238   :  { %v1765_v55 = vmul.f32 %v4887_v6, %v943_v53  ;;  %v2113_v12 = vmul.f32 %v4858_v30, %v943_v53 }
 0x23a   :  { %v1775_v3 = vadd.f32 %v1771_v46, %v1765_v55  ;;  %v4962_v57 = vadd.f32 %v2119_v49, %v2113_v12 }
 0x23f   :  { %v3885_v38 = vpop.f32.mrb[8].mxu1 }
 0x240   :  { %v1872_v8 = vadd.f32 %v3885_v38, %v3435_v61  ;;  %v1866_v13 = vpop.f32.mrb[9].mxu1 }
 0x241   :  { %v1867_v63 = vadd.f32 %v3435_v61, %v1866_v13 }
 0x242   :  { %v1886_v0 = vmax.f32 %v1872_v8, 0.0 }
 0x243   :  { %v1885_v4 = vmax.f32 %v1867_v63, 0.0  ;;  %v3888_v10 = vpop.f32.mrb[10].mxu1 }
 0x244   :  { %v1882_v45 = vadd.f32 %v3888_v10, %v3435_v61  ;;  %v1876_v52 = vpop.f32.mrb[11].mxu1  ;;  %v2463_v10 = vld [vmem:[%s5235_s5 + $0x10] sm:$0xff] }
 0x245   :  { %v4159_v11 = vpack.c.bf16 %v1886_v0, %v1885_v4  ;;  %v1877_v6 = vadd.f32 %v3435_v61, %v1876_v52 }
 0x246   :  { %v1888_v7 = vmax.f32 %v1882_v45, 0.0  ;;  %v2464_v45 = vld [vmem:[%s5235_s5 + $0x18] sm:$0xff] }
 0x247   :  { %v1887_v30 = vmax.f32 %v1877_v6, 0.0  ;;  %4160 = vmatprep.subr.bf16.mxu0 %v4159_v11  ;;  %v4203_v52 = vpack.c.bf16 %v2464_v45, %v2463_v10 }
 0x248   :  { %4162 = vmatpush3.bf16.msra.mxu0 %v4159_v11  ;;  %v2686_v11 = vld [vmem:[%s5239_s9] sm:$0xff] }
 0x249   :  { %v4163_v14 = vpack.c.bf16 %v1888_v7, %v1887_v30  ;;  %v5038_v6 = vand.u32 4294901760, %v2686_v11  ;;  %v2573_v7 = vld [vmem:[%s5237_s7] sm:$0xff]  ;;  %v2574_v30 = vld [vmem:[%s5237_s7 + $0x8] sm:$0xff] }
 0x24b   :  { %4164 = vmatprep.subr.bf16.mxu0 %v4163_v14 }
 0x24c   :  { %4166 = vmatpush3.bf16.msra.mxu0 %v4163_v14  ;;  %v4207_v14 = vpack.c.bf16 %v2574_v30, %v2573_v7  ;;  %v2579_v7 = vld [vmem:[%s5237_s7 + $0x30] sm:$0xff]  ;;  %v2580_v30 = vld [vmem:[%s5237_s7 + $0x38] sm:$0xff] }
 0x24d   :  { %4176 = vmatprep.subr.bf16.mxu0 %v4175_v50 }
 0x24f   :  { %3898 = vmatmul.mubr.msk.f32.vlgmr.msra.gmra.mrb[12].mxu0 %vm866_vm8, %v1773_v43  ;;  %v4179_v43 = vpack.c.bf16 %v2128_v56, %v2127_v24 }
 0x250   :  { %3900 = vmatprep.mubr.msk.f32.mxu0 %vm866_vm8, %v1774_v51  ;;  %4178 = vmatpush3.bf16.msra.mxu0 %v4175_v50  ;;  %v5062_v50 = vld [vmem:[%s5230_s0] sm:$0xff] }
 0x251   :  { %4180 = vmatprep.subr.bf16.mxu0 %v4179_v43  ;;  %v2688_v24 = vsel %vm235_vm7, %v5062_v50, 0 }
 0x252   :  { %v5066_v56 = vand.u32 4294901760, %v2688_v24 }
 0x253   :  { %3901 = vmatmul.mubr.msk.f32.gmra.mrb[14].mxu0 %vm866_vm8, %v1775_v3 }
 0x254   :  { %4182 = vmatpush3.bf16.msra.mxu0 %v4179_v43  ;;  %v5071_v43 = vld [vmem:[%s5230_s0 + $0x8] sm:$0xff] }
 0x322   :  { %v3899_v19 = vpop.f32.mrb[12].mxu0 }
 0x323   :  { %v1967_v21 = vpop.f32.mrb[13].mxu0 }
 0x324   :  { %3911 = vmatprep.mubr.msk.f32.mxu1 %vm866_vm8, %v1967_v21  ;;  %v2576_v21 = vld [vmem:[%s5237_s7 + $0x18] sm:$0xff] }
 0x325   :  { %3912 = vmatmul.mubr.msk.f32.vlgmr.msra.gmra.mrb[12].mxu1 %vm866_vm8, %v3899_v19  ;;  %v2575_v19 = vld [vmem:[%s5237_s7 + $0x10] sm:$0xff] }
 0x326   :  { %v3902_v22 = vpop.f32.mrb[14].mxu0 }
 0x327   :  { %v1977_v23 = vpop.f32.mrb[15].mxu0 }
 0x328   :  { %3914 = vmatprep.mubr.msk.f32.mxu1 %vm866_vm8, %v1977_v23  ;;  %v2577_v23 = vld [vmem:[%s5237_s7 + $0x20] sm:$0xff] }
 0x329   :  { %3915 = vmatmul.mubr.msk.f32.gmra.mrb[14].mxu1 %vm866_vm8, %v3902_v22  ;;  %v4211_v22 = vpack.c.bf16 %v2576_v21, %v2575_v19  ;;  %v4215_v34 = vpack.c.bf16 %v2578_v47, %v2577_v23 }
 0x32a   :  { %3939 = vmatprep.mubr.msk.f32.mxu1 %vm866_vm8, %v2120_v40 }
 0x3f8   :  { %v3913_v27 = vpop.f32.mrb[12].mxu1 }
 0x3f9   :  { %v2089_v28 = vadd.f32 %v3913_v27, %v1757_v25  ;;  %v2069_v35 = vpop.f32.mrb[13].mxu1  ;;  %v2691_v27 = vsel %vm235_vm7, %v5071_v43, 0 }
 0x3fa   :  { %v2088_v41 = vadd.f32 %v2069_v35, %v1756_v16  ;;  %v2807_v35 = vsub.f32 %v2686_v11, %v5038_v6 }
 0x3fb   :  { %v4982_v44 = vadd.f32 %v3449_v1, %v2089_v28 }
 0x3fc   :  { %v4984_v9 = vadd.f32 %v3449_v1, %v2088_v41  ;;  %v3916_v39 = vpop.f32.mrb[14].mxu1  ;;  %v5083_v41 = vand.u32 4294901760, %v2691_v27 }
 0x3fd   :  { %v2091_v48 = vadd.f32 %v3916_v39, %v1759_v33  ;;  %v2079_v40 = vpop.f32.mrb[15].mxu1  ;;  %v2105_v18 = vmax.f32 %v4982_v44, 0.0  ;;  %v2338_v33 = vld [vmem:[#allocation2 + $0x70] sm:$0xff] }
 0x3fe   :  { %v2104_v17 = vmax.f32 %v4984_v9, 0.0  ;;  %v2090_v15 = vadd.f32 %v2079_v40, %v1758_v32  ;;  %v2337_v32 = vld [vmem:[#allocation2 + $0x68] sm:$0xff]  ;;  %v4195_v58 = vpack.c.bf16 %v2339_v42, %v2338_v33  ;;  %v5089_v40 = vsub.f32 %v2688_v24, %v5066_v56 }
 0x3ff   :  { %v4992_v25 = vadd.f32 %v3449_v1, %v2091_v48  ;;  %v4191_v36 = vpack.c.bf16 %v2337_v32, %v2336_v29  ;;  %v3467_v48 = vld [vmem:[%s5233_s3 + $0x4] ss:$0 sm:$0xff]  ;;  %v5096_v29 = vld [vmem:[%s5230_s0 + $0x18] sm:$0xff]  ;;  %v2808_v42 = vand.u32 4294901760, %v2807_v35 }
 0x400   :  { %v4994_v20 = vadd.f32 %v3449_v1, %v2090_v15  ;;  %3925 = vmatprep.mubr.msk.f32.mxu0 %vm866_vm8, %v2104_v17  ;;  %v5078_v1 = vld [vmem:[%s5230_s0 + $0x10] sm:$0xff]  ;;  %v2697_v32 = vsel %vm235_vm7, %v5096_v29, 0 }
 0x401   :  { %3926 = vmatmul.mubr.msk.f32.vlgmr.msra.gmra.mrb[16].mxu0 %vm866_vm8, %v2105_v18  ;;  %v2107_v26 = vmax.f32 %v4992_v25, 0.0  ;;  %4192 = vmatprep.subr.bf16.mxu0 %v4191_v36  ;;  %v2694_v28 = vsel %vm235_vm7, %v5078_v1, 0 }
 0x402   :  { %v2106_v16 = vmax.f32 %v4994_v20, 0.0  ;;  %4194 = vmatpush3.bf16.msra.mxu0 %v4191_v36  ;;  %v5091_v15 = vand.u32 4294901760, %v2694_v28 }
 0x403   :  { %4196 = vmatprep.subr.bf16.mxu0 %v4195_v58 }
 0x404   :  { %3928 = vmatprep.mubr.msk.f32.mxu0 %vm866_vm8, %v2106_v16 }
 0x405   :  { %3929 = vmatmul.mubr.msk.f32.gmra.mrb[18].mxu0 %vm866_vm8, %v2107_v26 }
 0x406   :  { %4198 = vmatpush3.bf16.msra.mxu0 %v4195_v58 }
 0x407   :  { %4208 = vmatprep.subr.bf16.mxu0 %v4207_v14 }
 0x4d4   :  { %v3927_v62 = vpop.f32.mrb[16].mxu0 }
 0x4d5   :  { %v2221_v31 = vadd.f32 %v3927_v62, %v3453_v60  ;;  %v2215_v5 = vpop.f32.mrb[17].mxu0  ;;  %v2776_v62 = vsub.f32 %v2691_v27, %v5083_v41 }
 0x4d6   :  { %v2216_v37 = vadd.f32 %v3453_v60, %v2215_v5 }
 0x4d7   :  { %v2235_v51 = vmax.f32 %v2221_v31, 0.0  ;;  %v5105_v31 = vand.u32 4294901760, %v2697_v32 }
 0x4d8   :  { %v2234_v53 = vmax.f32 %v2216_v37, 0.0  ;;  %v3930_v46 = vpop.f32.mrb[18].mxu0 }
 0x4d9   :  { %v2231_v49 = vadd.f32 %v3930_v46, %v3453_v60  ;;  %v2225_v55 = vpop.f32.mrb[19].mxu0 }
 0x4da   :  { %v4183_v12 = vpack.c.bf16 %v2235_v51, %v2234_v53  ;;  %v2226_v3 = vadd.f32 %v3453_v60, %v2225_v55  ;;  %v2767_v51 = vand.u32 4294901760, %v5089_v40  ;;  %v2786_v53 = vsub.f32 %v2694_v28, %v5091_v15 }
 0x4db   :  { %v2237_v61 = vmax.f32 %v2231_v49, 0.0  ;;  %v2809_v49 = vsub.f32 %v2807_v35, %v2808_v42 }
 0x4dc   :  { %v2236_v38 = vmax.f32 %v2226_v3, 0.0  ;;  %4184 = vmatprep.subr.bf16.mxu1 %v4183_v12  ;;  %v2796_v3 = vsub.f32 %v2697_v32, %v5105_v31  ;;  %v3473_v32 = vld [vmem:[%s5238_s8] ss:$0 sm:$0xff]  ;;  %s4394_s8 = smov [#allocation7]  }
 0x4dd   :  { %4186 = vmatpush3.bf16.msra.mxu1 %v4183_v12  ;;  %v2777_v12 = vand.u32 4294901760, %v2776_v62 }
 0x4de   :  { %v4187_v8 = vpack.c.bf16 %v2237_v61, %v2236_v38  ;;  %v2797_v20 = vand.u32 4294901760, %v2796_v3 }
 0x4e0   :  { %4188 = vmatprep.subr.bf16.mxu1 %v4187_v8  ;;  %v2798_v45 = vsub.f32 %v2796_v3, %v2797_v20 }
 0x4e1   :  { %4190 = vmatpush3.bf16.msra.mxu1 %v4187_v8  ;;  %v2768_v8 = vsub.f32 %v5089_v40, %v2767_v51 }
 0x4e2   :  { %v2799_v11 = vand.u32 4294901760, %v2798_v45 }
 0x4e4   :  { %3940 = vmatmul.mubr.msk.f32.vlgmr.msra.gmra.mrb[16].mxu1 %vm866_vm8, %v4933_v59  ;;  %v2461_v59 = vld [vmem:[%s5235_s5] sm:$0xff] }
 0x4e5   :  { %3942 = vmatprep.mubr.msk.f32.mxu1 %vm866_vm8, %v4956_v54  ;;  %v2462_v54 = vld [vmem:[%s5235_s5 + $0x8] sm:$0xff]  ;;  %s3397_s5 = sshll.u32 %s4394_s8, 4  ;;  %s3398_s5 = int_to_ptr.vmem [resolvable:$true] %s3397_s5 }
 0x4e6   :  { %s4360_s24 = scalar_lea.vmem %s3398_s5, 1536  ;;  %p4365_p0 = scmp.lt.s32.totalorder %s3398_s5, %s3398_s5 }
 0x4e7   :  { %p4361_p13 = scmp.ne.s32.totalorder %s3398_s5, %s4360_s24  ;;  %p4366_p1 = scmp.lt.s32.totalorder %s4360_s24, %s4360_s24 }
 0x4e8   :  { %3943 = vmatmul.mubr.msk.f32.gmra.mrb[18].mxu1 %vm866_vm8, %v4962_v57  ;;  %v4199_v57 = vpack.c.bf16 %v2462_v54, %v2461_v59  ;;  %v2769_v59 = vand.u32 4294901760, %v2768_v8 }
 0x4e9   :  { %p4367_p2 = por %p4366_p1, %p4365_p0 }
 0x4ea   :  { %4200 = vmatprep.subr.bf16.mxu1 %v4199_v57 }
 0x4eb   :  { %4202 = vmatpush3.bf16.msra.mxu1 %v4199_v57  ;;  %p4368_p3 = pnand %p4367_p2, %p4361_p13 }
 0x4ec   :  { %4204 = vmatprep.subr.bf16.mxu1 %v4203_v52 }
 0x4ef   :  { %4206 = vmatpush3.bf16.msra.mxu1 %v4203_v52 }
 0x4f0   :  { %3995 = vmatprep.subr.mxu1 %v5038_v6 }
 0x5b7   :  { %v3941_v13 = vpop.f32.mrb[16].mxu1 }
 0x5b8   :  { %v2316_v63 = vpop.f32.mrb[17].mxu1 }
 0x5b9   :  { %3953 = vmatprep.mubr.msk.f32.mxu0 %vm866_vm8, %v2316_v63 }
 0x5ba   :  { %3954 = vmatmul.mubr.msk.f32.vlgmr.msra.gmra.mrb[20].mxu0 %vm866_vm8, %v3941_v13  ;;  %v2787_v13 = vand.u32 4294901760, %v2786_v53 }
 0x5bb   :  { %v3944_v0 = vpop.f32.mrb[18].mxu1  ;;  %4210 = vmatpush3.bf16.msra.mxu0 %v4207_v14  ;;  %v4219_v14 = vpack.c.bf16 %v2580_v30, %v2579_v7 }
 0x5bc   :  { %v2326_v4 = vpop.f32.mrb[19].mxu1  ;;  %4212 = vmatprep.subr.bf16.mxu0 %v4211_v22  ;;  %v2788_v54 = vsub.f32 %v2786_v53, %v2787_v13 }
 0x5bd   :  { %3956 = vmatprep.mubr.msk.f32.mxu0 %vm866_vm8, %v2326_v4  ;;  %v2810_v4 = vand.u32 4294901760, %v2809_v49 }
 0x5be   :  { %3957 = vmatmul.mubr.msk.f32.gmra.mrb[22].mxu0 %vm866_vm8, %v3944_v0  ;;  %v2789_v52 = vand.u32 4294901760, %v2788_v54 }
 0x5bf   :  { %4214 = vmatpush3.bf16.msra.mxu0 %v4211_v22 }
 0x5c0   :  { %4216 = vmatprep.subr.bf16.mxu0 %v4215_v34 }
 0x5c3   :  { %4218 = vmatpush3.bf16.msra.mxu0 %v4215_v34 }
 0x5c4   :  { %4220 = vmatprep.subr.bf16.mxu0 %v4219_v14 }
 0x5c7   :  { %4222 = vmatpush3.bf16.msra.mxu0 %v4219_v14 }
 0x68d   :  { %v3955_v39 = vpop.f32.mrb[20].mxu0 }
 0x68e   :  { %v2438_v33 = vadd.f32 %v3955_v39, %v2105_v18  ;;  %v2418_v36 = vpop.f32.mrb[21].mxu0 }
 0x68f   :  { %v2437_v58 = vadd.f32 %v2418_v36, %v2104_v17 }
 0x690   :  { %v2450_v60 = vadd.f32 %v3467_v48, %v2438_v33 }
 0x691   :  { %v2449_v5 = vadd.f32 %v3467_v48, %v2437_v58  ;;  %v3958_v37 = vpop.f32.mrb[22].mxu0 }
 0x692   :  { %v2454_v46 = vmax.f32 %v2450_v60, 0.0  ;;  %v2440_v44 = vadd.f32 %v3958_v37, %v2107_v26  ;;  %v2428_v18 = vpop.f32.mrb[23].mxu0  ;;  %v2778_v26 = vsub.f32 %v2776_v62, %v2777_v12 }
 0x693   :  { %v2453_v55 = vmax.f32 %v2449_v5, 0.0  ;;  %v2439_v9 = vadd.f32 %v2428_v18, %v2106_v16 }
 0x694   :  { %v2452_v17 = vadd.f32 %v3467_v48, %v2440_v44  ;;  %v2458_v63 = vmax.f32 %v2454_v46, 0.0  ;;  %v2779_v10 = vand.u32 4294901760, %v2778_v26 }
 0x695   :  { %v2457_v61 = vmax.f32 %v2453_v55, 0.0  ;;  %v2451_v38 = vadd.f32 %v3467_v48, %v2439_v9 }
 0x696   :  { %v2456_v0 = vmax.f32 %v2452_v17, 0.0 }
 0x697   :  { %v2455_v25 = vmax.f32 %v2451_v38, 0.0  ;;  %3967 = vmatprep.mubr.msk.f32.mxu1 %vm866_vm8, %v2457_v61 }
 0x698   :  { %3968 = vmatmul.mubr.msk.f32.vlgmr.msra.gmra.mrb[20].mxu1 %vm866_vm8, %v2458_v63  ;;  %v2460_v57 = vmax.f32 %v2456_v0, 0.0 }
 0x699   :  { %v2459_v16 = vmax.f32 %v2455_v25, 0.0  ;;  %3996 = vmatpush3.msra.mxu1 %v5038_v6 }
 0x69a   :  { %4003 = vmatprep.subr.mxu1 %v2810_v4 }
 0x69b   :  { %3970 = vmatprep.mubr.msk.f32.mxu1 %vm866_vm8, %v2459_v16 }
 0x69c   :  { %3971 = vmatmul.mubr.msk.f32.gmra.mrb[22].mxu1 %vm866_vm8, %v2460_v57  ;;  %vm2588_vm8 = vcmask 523264  }
 0x69d   :  { %3997 = vmatprep.mubr.f32.mxu1 %v2769_v59 }
 0x6a0   :  { %3998 = vmatmul.mubr.f32.vlgmr.msra.gmra.mrb[24].mxu1 %v2779_v10 }
 0x6a1   :  { %4000 = vmatprep.mubr.f32.mxu1 %v2789_v52  ;;  %4004 = vmatpush3.msra.mxu1 %v2810_v4 }
 0x6a2   :  { %4011 = vmatprep.subr.mxu1 %v2807_v35 }
 0x6a4   :  { %4001 = vmatmul.mubr.f32.gmra.mrb[26].mxu1 %v2799_v11 }
 0x6a5   :  { %4005 = vmatprep.mubr.f32.mxu1 %v5066_v56 }
 0x6a8   :  { %4006 = vmatmul.mubr.f32.vlgmr.msra.gmra.mrb[24].mxu1 %v5083_v41 }
 0x6a9   :  { %4008 = vmatprep.mubr.f32.mxu1 %v5091_v15  ;;  %4012 = vmatpush3.msra.mxu1 %v2807_v35 }
 0x6aa   :  { %4019 = vmatprep.subr.mxu1 %v5038_v6 }
 0x6ac   :  { %4009 = vmatmul.mubr.f32.gmra.mrb[26].mxu1 %v5105_v31 }
 0x6ad   :  { %4013 = vmatprep.mubr.f32.mxu1 %v5089_v40 }
 0x6b0   :  { %4014 = vmatmul.mubr.f32.vlgmr.msra.gmra.mrb[24].mxu1 %v2776_v62 }
 0x6b1   :  { %4016 = vmatprep.mubr.f32.mxu1 %v2786_v53  ;;  %4020 = vmatpush3.msra.mxu1 %v5038_v6 }
 0x6b2   :  { %4027 = vmatprep.subr.mxu1 %v2808_v42 }
 0x6b4   :  { %4017 = vmatmul.mubr.f32.gmra.mrb[26].mxu1 %v2796_v3 }
 0x6b5   :  { %4021 = vmatprep.mubr.f32.mxu1 %v2767_v51 }
 0x6b8   :  { %4022 = vmatmul.mubr.f32.vlgmr.msra.gmra.mrb[24].mxu1 %v2777_v12 }
 0x6b9   :  { %4024 = vmatprep.mubr.f32.mxu1 %v2787_v13  ;;  %4028 = vmatpush3.msra.mxu1 %v2808_v42 }
 0x6ba   :  { %4035 = vmatprep.subr.mxu1 %v5038_v6 }
 0x6bc   :  { %4025 = vmatmul.mubr.f32.gmra.mrb[26].mxu1 %v2797_v20 }
 0x6bd   :  { %4029 = vmatprep.mubr.f32.mxu1 %v5066_v56 }
 0x6c0   :  { %4030 = vmatmul.mubr.f32.vlgmr.msra.gmra.mrb[24].mxu1 %v5083_v41 }
 0x6c1   :  { %4032 = vmatprep.mubr.f32.mxu1 %v5091_v15  ;;  %4036 = vmatpush3.msra.mxu1 %v5038_v6  ;;  %v3468_v6 = vld [vmem:[%s5236_s6] ss:$0 sm:$0xff] }
 0x6c4   :  { %4033 = vmatmul.mubr.f32.gmra.mrb[26].mxu1 %v5105_v31 }
 0x6c5   :  { %4037 = vmatprep.mubr.f32.mxu1 %v5066_v56 }
 0x6c8   :  { %4038 = vmatmul.mubr.f32.vlgmr.msra.gmra.mrb[24].mxu1 %v5083_v41 }
 0x6c9   :  { %4040 = vmatprep.mubr.f32.mxu1 %v5091_v15 }
 0x6cc   :  { %4041 = vmatmul.mubr.f32.gmra.mrb[26].mxu1 %v5105_v31 }
 0x76b   :  { %v3969_v19 = vpop.f32.mrb[20].mxu1 }
 0x76c   :  { %v2556_v21 = vadd.f32 %v3969_v19, %v3468_v6  ;;  %v2550_v22 = vpop.f32.mrb[21].mxu1 }
 0x76d   :  { %v2551_v23 = vadd.f32 %v3468_v6, %v2550_v22 }
 0x76e   :  { %v2570_v24 = vmax.f32 %v2556_v21, 0.0 }
 0x76f   :  { %v2569_v47 = vmax.f32 %v2551_v23, 0.0  ;;  %v3972_v34 = vpop.f32.mrb[22].mxu1 }
 0x770   :  { %v2566_v56 = vadd.f32 %v3972_v34, %v3468_v6  ;;  %v2560_v27 = vpop.f32.mrb[23].mxu1 }
 0x771   :  { %v2561_v28 = vadd.f32 %v3468_v6, %v2560_v27  ;;  %3989 = vmatprep.mubr.msk.f32.mxu0 %vm2588_vm8, %v2569_v47 }
 0x772   :  { %3990 = vmatmul.mubr.msk.f32.vlgmr.msra.gmra.mrb[24].mxu0 %vm2588_vm8, %v2570_v24  ;;  %v2572_v41 = vmax.f32 %v2566_v56, 0.0 }
 0x773   :  { %v2571_v35 = vmax.f32 %v2561_v28, 0.0 }
 0x775   :  { %3992 = vmatprep.mubr.msk.f32.mxu0 %vm2588_vm8, %v2571_v35 }
 0x776   :  { %3993 = vmatmul.mubr.msk.f32.gmra.mrb[26].mxu0 %vm2588_vm8, %v2572_v41 }
 0x79b   :  { %v4039_v39 = vpop.f32.mrb[24].mxu1 }
 0x79c   :  { %v3252_v48 = vpop.f32.mrb[25].mxu1 }
 0x79f   :  { %v4042_v40 = vpop.f32.mrb[26].mxu1 }
 0x7a0   :  { %v3264_v15 = vpop.f32.mrb[27].mxu1 }
 0x845   :  { %v3991_v33 = vpop.f32.mrb[24].mxu0 }
 0x846   :  { %v2673_v36 = vadd.f32 %v3991_v33, %v3473_v32  ;;  %v2667_v42 = vpop.f32.mrb[25].mxu0 }
 0x847   :  { %v2668_v58 = vadd.f32 %v3473_v32, %v2667_v42 }
 0x848   :  { %v3275_v62 = vadd.f32 %v4039_v39, %v2673_v36  ;;  %3284 = vrot.lane.b32.xlu1 %v2673_v36, %s4393_s23 }
 0x849   :  { %v3274_v31 = vadd.f32 %v3252_v48, %v2668_v58  ;;  %3282 = vrot.lane.b32.xlu0 %v2668_v58, %s4393_s23  ;;  %v3994_v5 = vpop.f32.mrb[26].mxu0 }
 0x84a   :  { %v3375_v37 = vsel %vm5151_vm15, %v5071_v43, %v3275_v62  ;;  %3379 = vst.msk [vmem:[#allocation7 + $0x8] sm:$0xff] %vm235_vm7, %v3275_v62  ;;  %v2683_v2 = vadd.f32 %v3994_v5, %v3473_v32  ;;  %v2677_v51 = vpop.f32.mrb[27].mxu0 }
 0x84b   :  { %3389 = vst.msk [vmem:[#allocation7 + $0x48] sm:$0xff] %vm235_vm7, %v3375_v37  ;;  %v3374_v53 = vsel %vm5151_vm15, %v5062_v50, %v3274_v31  ;;  %3378 = vst.msk [vmem:[#allocation7] sm:$0xff] %vm235_vm7, %v3274_v31  ;;  %v2678_v46 = vadd.f32 %v3473_v32, %v2677_v51 }
 0x84c   :  { %3388 = vst.msk [vmem:[#allocation7 + $0x40] sm:$0xff] %vm235_vm7, %v3374_v53  ;;  %v3277_v44 = vadd.f32 %v4042_v40, %v2683_v2 }
 0x84d   :  { %v3276_v18 = vadd.f32 %v3264_v15, %v2678_v46  ;;  %3286 = vrot.lane.b32.xlu1 %v2678_v46, %s4393_s23 }
 0x84e   :  { %v3377_v43 = vsel %vm5151_vm15, %v5096_v29, %v3277_v44  ;;  %3381 = vst.msk [vmem:[#allocation7 + $0x18] sm:$0xff] %vm235_vm7, %v3277_v44 }
 0x84f   :  { %3391 = vst.msk [vmem:[#allocation7 + $0x58] sm:$0xff] %vm235_vm7, %v3377_v43  ;;  %v3376_v50 = vsel %vm5151_vm15, %v5078_v1, %v3276_v18  ;;  %3380 = vst.msk [vmem:[#allocation7 + $0x10] sm:$0xff] %vm235_vm7, %v3276_v18 }
 0x850   :  { %3390 = vst.msk [vmem:[#allocation7 + $0x50] sm:$0xff] %vm235_vm7, %v3376_v50 }
 0x851   :  { %3288 = vrot.lane.b32.xlu1 %v2683_v2, %s4393_s23 }
 0x8ba   :  { %v3285_v49 = vpop.permute.xlu1 %3284 }
 0x8bb   :  { %v5177_v55 = vsel %vm5151_vm15, 1e-05, %v3285_v49  ;;  %v3283_v9 = vpop.permute.xlu0 %3282 }
 0x8bc   :  { %v3311_v29 = vand.u32 2147483647, %v5177_v55  ;;  %v5182_v17 = vsel %vm5151_vm15, 1e-05, %v3283_v9  ;;  %v3299_v56 = vmax.f32 %v5177_v55, 0.0  ;;  %vm3303_vm3 = vcmp.ne.f32.partialorder %v5177_v55, %v5177_v55 }
 0x8bd   :  { %v3310_v12 = vand.u32 2147483647, %v5182_v17  ;;  %v3298_v15 = vmax.f32 %v5182_v17, 0.0  ;;  %vm3302_vm4 = vcmp.ne.f32.partialorder %v5182_v17, %v5182_v17 }
 0x8be   :  { %v3315_v1 = vsub.f32 0.0, %v3311_v29 }
 0x8bf   :  { %v3314_v3 = vsub.f32 0.0, %v3310_v12  ;;  %v3287_v61 = vpop.permute.xlu1 %3286 }
 0x8c0   :  { %v3320_v38 = vmul.f32 1.442695, %v3315_v1  ;;  %v5187_v8 = vsel %vm5151_vm15, 1e-05, %v3287_v61 }
 0x8c1   :  { %v3318_v13 = vmul.f32 1.442695, %v3314_v3  ;;  %v3312_v63 = vand.u32 2147483647, %v5187_v8  ;;  %v3300_v60 = vmax.f32 %v5187_v8, 0.0  ;;  %vm3304_vm0 = vcmp.ne.f32.partialorder %v5187_v8, %v5187_v8 }
 0x8c2   :  { %4306 = vpow2.f32 %v3320_v38 }
 0x8c3   :  { %4308 = vpow2.f32 %v3318_v13  ;;  %v3316_v0 = vsub.f32 0.0, %v3312_v63  ;;  %v3289_v4 = vpop.permute.xlu1 %3288 }
 0x8c4   :  { %v5192_v25 = vsel %vm5151_vm15, 1e-05, %v3289_v4 }
 0x8c5   :  { %v3322_v26 = vmul.f32 1.442695, %v3316_v0  ;;  %v3313_v20 = vand.u32 2147483647, %v5192_v25  ;;  %v3301_v9 = vmax.f32 %v5192_v25, 0.0  ;;  %vm3305_vm9 = vcmp.ne.f32.partialorder %v5192_v25, %v5192_v25 }
 0x8c7   :  { %4310 = vpow2.f32 %v3322_v26  ;;  %v3317_v16 = vsub.f32 0.0, %v3313_v20 }
 0x8c9   :  { %v3324_v59 = vmul.f32 1.442695, %v3317_v16 }
 0x8cb   :  { %4312 = vpow2.f32 %v3324_v59 }
 0x8cc   :  { %v4307_v54 = vpop.eup %4306 }
 0x8cd   :  { %v4309_v57 = vpop.eup %4308  ;;  %v3335_v10 = vadd.f32 1.0, %v4307_v54  ;;  %v3338_v11 = vmul.f32 -0.5, %v4307_v54  ;;  %v3341_v19 = vand.u32 2147483647, %v4307_v54 }
 0x8ce   :  { %v3326_v45 = vadd.f32 1.0, %v4309_v57  ;;  %v3329_v30 = vmul.f32 -0.5, %v4309_v57  ;;  %v3332_v47 = vand.u32 2147483647, %v4309_v57 }
 0x8cf   :  { %4314 = vlog2.f32 %v3335_v10  ;;  %v3339_v6 = vadd.f32 1.0, %v3338_v11  ;;  %vm3342_vm1 = vcmp.lt.f32.partialorder %v3341_v19, 0.0004427343 }
 0x8d0   :  { %4316 = vlog2.f32 %v3326_v45  ;;  %v3330_v22 = vadd.f32 1.0, %v3329_v30  ;;  %vm3333_vm2 = vcmp.lt.f32.partialorder %v3332_v47, 0.0004427343 }
 0x8d1   :  { %v4311_v52 = vpop.eup %4310  ;;  %v3340_v28 = vmul.f32 %v4307_v54, %v3339_v6 }
 0x8d2   :  { %v3344_v7 = vadd.f32 1.0, %v4311_v52  ;;  %v3347_v23 = vmul.f32 -0.5, %v4311_v52  ;;  %v3331_v41 = vmul.f32 %v4309_v57, %v3330_v22  ;;  %v3350_v32 = vand.u32 2147483647, %v4311_v52 }
 0x8d4   :  { %4318 = vlog2.f32 %v3344_v7  ;;  %v3348_v39 = vadd.f32 1.0, %v3347_v23  ;;  %vm3351_vm5 = vcmp.lt.f32.partialorder %v3350_v32, 0.0004427343 }
 0x8d5   :  { %v4313_v14 = vpop.eup %4312 }
 0x8d6   :  { %v3353_v21 = vadd.f32 1.0, %v4313_v14  ;;  %v3356_v48 = vmul.f32 -0.5, %v4313_v14  ;;  %v3349_v5 = vmul.f32 %v4311_v52, %v3348_v39  ;;  %v3359_v53 = vand.u32 2147483647, %v4313_v14 }
 0x8d8   :  { %4320 = vlog2.f32 %v3353_v21  ;;  %v3357_v37 = vadd.f32 1.0, %v3356_v48  ;;  %vm3360_vm6 = vcmp.lt.f32.partialorder %v3359_v53, 0.0004427343 }
 0x8d9   :  { %v4315_v34 = vpop.eup %4314 }
 0x8da   :  { %v4317_v24 = vpop.eup %4316  ;;  %v3337_v27 = vmul.f32 0.6931472, %v4315_v34  ;;  %v3358_v49 = vmul.f32 %v4313_v14, %v3357_v37 }
 0x8db   :  { %v3328_v35 = vmul.f32 0.6931472, %v4317_v24 }
 0x8dc   :  { %v3343_v40 = vsel %vm3342_vm1, %v3340_v28, %v3337_v27 }
 0x8dd   :  { %v3363_v33 = vadd.f32 %v3343_v40, %v3299_v56  ;;  %v3334_v36 = vsel %vm3333_vm2, %v3331_v41, %v3328_v35 }
 0x8de   :  { %v4319_v42 = vpop.eup %4318  ;;  %v3362_v58 = vadd.f32 %v3334_v36, %v3298_v15 }
 0x8df   :  { %v3367_v62 = vsel %vm3303_vm3, %v5177_v55, %v3363_v33  ;;  %v3346_v31 = vmul.f32 0.6931472, %v4319_v42 }
 0x8e0   :  { %v3371_v2 = vadd.f32 1e-05, %v3367_v62  ;;  %v3366_v51 = vsel %vm3302_vm4, %v5182_v17, %v3362_v58 }
 0x8e1   :  { %v3370_v46 = vadd.f32 1e-05, %v3366_v51  ;;  %v3352_v44 = vsel %vm3351_vm5, %v3349_v5, %v3346_v31 }
 0x8e2   :  { %v4321_v18 = vpop.eup %4320  ;;  %3384 = vst.msk [vmem:[#allocation7 + $0x28] sm:$0xff] %vm235_vm7, %v3371_v2  ;;  %v3364_v43 = vadd.f32 %v3352_v44, %v3300_v60 }
 0x8e3   :  { %3383 = vst.msk [vmem:[#allocation7 + $0x20] sm:$0xff] %vm235_vm7, %v3370_v46  ;;  %v3355_v50 = vmul.f32 0.6931472, %v4321_v18 }
 0x8e4   :  { %v3368_v55 = vsel %vm3304_vm0, %v5187_v8, %v3364_v43 }
 0x8e5   :  { %v3372_v29 = vadd.f32 1e-05, %v3368_v55  ;;  %v3361_v17 = vsel %vm3360_vm6, %v3358_v49, %v3355_v50 }
 0x8e6   :  { %v3365_v12 = vadd.f32 %v3361_v17, %v3301_v9 }
 0x8e7   :  { %3385 = vst.msk [vmem:[#allocation7 + $0x30] sm:$0xff] %vm235_vm7, %v3372_v29 }
 0x8e8   :  { %v3369_v1 = vsel %vm3305_vm9, %v5192_v25, %v3365_v12 }
 0x8e9   :  { %v3373_v3 = vadd.f32 1e-05, %v3369_v1 }
 0x8eb   :  { %3386 = vst.msk [vmem:[#allocation7 + $0x38] sm:$0xff] %vm235_vm7, %v3373_v3 }
 0x8ec   :  { %4371 = shalt.err (!%p4368_p3)
}
 0x8ed   :  { %s4372_s27 = scalar_lea.hbm %s5240_s10, 1536 }
 0x8ee   :  { %p4373_p4 = scmp.ne.s32.totalorder %s5240_s10, %s4372_s27  ;;  %p4376_p5 = scmp.lt.u32.totalorder %s4372_s27, %s5240_s10 }
 0x8f0   :  { %p4378_p6 = pnand %p4376_p5, %p4373_p4 }
 0x8f2   :  { %4381 = shalt.err (!%p4378_p6)
}
 0x8f3   :  { %3403 = dma.vmem_to_hbm [thread:$0]  %s3398_s5, 1536, %s5240_s10, [#allocation4], %s4389_s4, %s4389_s4, %s4390_s26  }
 0x8f4   :  { %4386 = dma.done.wait [#allocation4], 1536  }
 0x8f5   :  { %4387 = vsyncadd [#allocation4], 4294965760 }
 0x8f6   :  { %3407 = vsyncpa [#allocation3], 1 }
 0x8f7   :  { %3408 = vsyncpa [#allocation4], 1 }
 0x8f8   :  { %3409 = vsyncpa [#allocation5], 1 }

</bundles_post_ra>
